<compile_context>
chip_gen: v7x
topology: tpu7x:2x2x1
jax: 0.10.0
libtpu: 0.0.40
codegen_flags: <defaults>
</compile_context>

<pallas_src>
import math

import jax
import jax.numpy as jnp
from jax import lax
from jax.experimental import pallas as pl
from jax.experimental.pallas import tpu as pltpu

NEG_INF = float("-inf")
_VMEM_BUDGET = 44 * 2**20          # conservative block+scratch budget (v7x-safe)


def _roundup(x, m):
    return -(-x // m) * m


def _padded_bytes(rows, cols, itemsize):
    """VMEM footprint of a (rows, cols) tile including sublane/lane padding."""
    sub = 8 * max(1, 4 // itemsize)            # 8 (f32) / 16 (bf16) / 32 (int8)
    return _roundup(max(rows, 1), sub) * _roundup(max(cols, 1), 128) * itemsize


def _vmem_estimate(tq, tk, s_pad, d, q_it, w_it, mask_it):
    est = 0
    est += 2 * _padded_bytes(tq, d, q_it)              # q block (double buffered)
    est += 2 * 2 * _padded_bytes(tk, d, q_it)          # k, v blocks
    est += 2 * _padded_bytes(tq, d, q_it)              # o block
    est += 2 * _padded_bytes(tq, s_pad, w_it)          # resident weights block
    if mask_it is not None:
        est += 2 * _padded_bytes(tq, tk, mask_it)      # mask block
    est += _padded_bytes(tq, d, q_it)                  # pre-scaled q scratch
    est += 2 * _padded_bytes(tq, 1, 4)                 # running max / denominator
    est += _padded_bytes(tq, d, 4)                     # f32 output accumulator
    return est


def _plan_tiles(batch, s, d, q_it, w_it, mask_it):
    """Pick (tq, tk, s_pad).  Prefer 256 tiles (256x256 MXU on v6e/v7x), drop
    tq to 128 when the resident (tq, S) weights block would blow the VMEM
    budget (v7x: 64 MiB total), and pad S up to a tile multiple."""
    for tq, tk in ((256, 256), (128, 256), (128, 128)):
        s_pad = _roundup(s, tk)
        if s_pad - s >= 128 and tk > 128:
            continue            # don't over-pad short / odd sequences for big tiles
        if _vmem_estimate(tq, tk, s_pad, d, q_it, w_it, mask_it) <= _VMEM_BUDGET:
            # v7x has 2 TensorCores: keep at least two parallel (b, qi) blocks.
            if batch * (s_pad // tq) < 2 and tq > 128 and s_pad // 128 >= 2:
                tq = 128
            return tq, tk, s_pad
    return 128, 128, _roundup(s, 128)                  # best effort for extreme S


def _attention_body(q_ref, k_ref, v_ref, mask_ref, o_ref, w_ref,
                    qs_ref, m_ref, l_ref, acc_ref,
                    *, scale, nk, tk, s_valid, tail):
    ki = pl.program_id(2)

    @pl.when(ki == 0)
    def _init():
        # Hoist the 1/sqrt(d_k) scaling of the resident q tile out of the kv loop.
        qs_ref[...] = q_ref[...] * scale
        m_ref[...] = jnp.full_like(m_ref, NEG_INF)
        l_ref[...] = jnp.zeros_like(l_ref)
        acc_ref[...] = jnp.zeros_like(acc_ref)

    q = qs_ref[...]                                   # (tq, D), pre-scaled, native dtype
    k = k_ref[...]                                    # (tk, D)
    v = v_ref[...]                                    # (tk, D)

    # q @ k^T: contract the last dims directly on the MXU (no k transpose).
    s = lax.dot_general(q, k, (((1,), (1,)), ((), ())),
                        preferred_element_type=jnp.float32)       # (tq, tk)

    if mask_ref is not None:
        s = jnp.where(mask_ref[...] == 0, NEG_INF, s)
    if tail:
        # S was padded up to a tile multiple: mask the padded key columns.
        col = ki * tk + lax.broadcasted_iota(jnp.int32, s.shape, dimension=1)
        s = jnp.where(col < s_valid, s, NEG_INF)

    m_prev = m_ref[...]                                           # (tq, 1)
    m_new = jnp.maximum(m_prev, jnp.max(s, axis=-1, keepdims=True))
    # Fully-masked-so-far rows keep m == -inf; shift by 0 to avoid inf - inf.
    m_safe = jnp.where(m_new == NEG_INF, 0.0, m_new)
    alpha = jnp.exp(m_prev - m_safe)                              # (tq, 1)
    p = jnp.exp(s - m_safe)                                       # (tq, tk)

    l_ref[...] = alpha * l_ref[...] + jnp.sum(p, axis=-1, keepdims=True)
    acc_ref[...] = alpha * acc_ref[...] + jnp.dot(
        p.astype(v.dtype), v, preferred_element_type=jnp.float32)
    m_ref[...] = m_new

    # Stash the raw masked scores into the resident (tq, S) weights block; they
    # are exponentiated and normalized once, in the finalize step below.
    if nk == 1:
        w_ref[...] = s.astype(w_ref.dtype)
    else:
        start = pl.multiple_of(ki * tk, tk)           # 128-aligned lane offset
        w_ref[:, pl.ds(start, tk)] = s.astype(w_ref.dtype)

    @pl.when(ki == nk - 1)
    def _finalize():
        l = l_ref[...]
        inv_l = pl.reciprocal(l, approx=True)         # EUP slot
        inv_l = inv_l * (2.0 - l * inv_l)             # one Newton step
        o_ref[...] = (acc_ref[...] * inv_l).astype(o_ref.dtype)
        # NOTE: fully-masked rows (l == 0) produce NaN, matching the reference.
        m_fin = jnp.where(m_ref[...] == NEG_INF, 0.0, m_ref[...])
        if nk == 1:
            sc = w_ref[...].astype(jnp.float32)
            w_ref[...] = (jnp.exp(sc - m_fin) * inv_l).astype(w_ref.dtype)
        else:
            def body(j, carry):
                start = pl.multiple_of(j * tk, tk)
                sc = w_ref[:, pl.ds(start, tk)].astype(jnp.float32)
                w_ref[:, pl.ds(start, tk)] = (
                    jnp.exp(sc - m_fin) * inv_l).astype(w_ref.dtype)
                return carry
            lax.fori_loop(0, nk, body, 0, unroll=nk <= 8)


def _make_kernel(has_mask, **kw):
    if has_mask:
        def kernel(q_ref, k_ref, v_ref, mask_ref, o_ref, w_ref,
                   qs_ref, m_ref, l_ref, acc_ref):
            _attention_body(q_ref, k_ref, v_ref, mask_ref, o_ref, w_ref,
                            qs_ref, m_ref, l_ref, acc_ref, **kw)
    else:
        def kernel(q_ref, k_ref, v_ref, o_ref, w_ref,
                   qs_ref, m_ref, l_ref, acc_ref):
            _attention_body(q_ref, k_ref, v_ref, None, o_ref, w_ref,
                            qs_ref, m_ref, l_ref, acc_ref, **kw)
    return kernel


def scaled_dot_product_attention(q, k, v, mask=None):
    """Pallas equivalent of ScaledDotProductAttention.forward.

    q, k, v: [B, S, D].  mask: optional [B, S, S], [1, S, S] or [S, S];
    mask == 0 -> -inf.  Returns (output [B, S, D], attn_weights [B, S, S]).
    """
    B, S, D = q.shape
    scale = 1.0 / math.sqrt(D)
    w_dtype = q.dtype
    q_it = jnp.dtype(q.dtype).itemsize
    w_it = jnp.dtype(w_dtype).itemsize
    mask_it = jnp.dtype(mask.dtype).itemsize if mask is not None else None

    tq, tk, s_pad = _plan_tiles(B, S, D, q_it, w_it, mask_it)
    nq, nk = s_pad // tq, s_pad // tk
    tail = s_pad != S
    pad = s_pad - S

    if tail:
        q = jnp.pad(q, ((0, 0), (0, pad), (0, 0)))
        k = jnp.pad(k, ((0, 0), (0, pad), (0, 0)))
        v = jnp.pad(v, ((0, 0), (0, pad), (0, 0)))

    in_specs = [
        pl.BlockSpec((None, tq, D), lambda b, qi, ki: (b, qi, 0)),
        pl.BlockSpec((None, tk, D), lambda b, qi, ki: (b, ki, 0)),
        pl.BlockSpec((None, tk, D), lambda b, qi, ki: (b, ki, 0)),
    ]
    args = [q, k, v]
    has_mask = mask is not None
    if has_mask:
        m3 = mask if mask.ndim == 3 else mask[None]
        if tail:
            m3 = jnp.pad(m3, ((0, 0), (0, pad), (0, pad)))
        if m3.shape[0] == 1:     # broadcast mask: never materialize B copies
            in_specs.append(
                pl.BlockSpec((None, tq, tk), lambda b, qi, ki: (0, qi, ki)))
        else:
            in_specs.append(
                pl.BlockSpec((None, tq, tk), lambda b, qi, ki: (b, qi, ki)))
        args.append(m3)          # original dtype, no wrapper-side conversion pass

    out_shape = (
        jax.ShapeDtypeStruct((B, s_pad, D), q.dtype),       # output
        jax.ShapeDtypeStruct((B, s_pad, s_pad), w_dtype),   # attention weights
    )
    out_specs = (
        pl.BlockSpec((None, tq, D), lambda b, qi, ki: (b, qi, 0)),
        pl.BlockSpec((None, tq, s_pad), lambda b, qi, ki: (b, qi, 0)),
    )
    scratch = [
        pltpu.VMEM((tq, D), q.dtype),          # pre-scaled q tile
        pltpu.VMEM((tq, 1), jnp.float32),      # running max
        pltpu.VMEM((tq, 1), jnp.float32),      # running denominator
        pltpu.VMEM((tq, D), jnp.float32),      # output accumulator
    ]

    est = _vmem_estimate(tq, tk, s_pad, D, q_it, w_it, mask_it)
    vmem_limit = int(max(est + 4 * 2**20, 16 * 2**20))

    kernel = _make_kernel(has_mask, scale=scale, nk=nk, tk=tk,
                          s_valid=S, tail=tail)

    o, w = pl.pallas_call(
        kernel,
        out_shape=out_shape,
        grid_spec=pltpu.PrefetchScalarGridSpec(
            num_scalar_prefetch=0,
            grid=(B, nq, nk),
            in_specs=in_specs,
            out_specs=out_specs,
            scratch_shapes=scratch,
        ),
        compiler_params=pltpu.CompilerParams(
            dimension_semantics=("parallel", "parallel", "arbitrary"),
            vmem_limit_bytes=vmem_limit,
        ),
    )(*args)

    if tail:
        o = o[:, :S, :]
        w = w[:, :S, :S]
    return o, w


def _reference(q, k, v, d_k, mask=None):
    s = jnp.einsum("bqd,bkd->bqk", q, k) / jnp.sqrt(jnp.float32(d_k))
    if mask is not None:
        s = jnp.where(mask == 0, -jnp.inf, s)
    w = jax.nn.softmax(s, axis=-1)
    o = jnp.einsum("bqk,bkd->bqd", w, v)
    return o, w


def _check(q, k, v, mask=None, atol=2e-4, rtol=2e-4):
    out, attn = scaled_dot_product_attention(q, k, v, mask)
    jax.block_until_ready(out)
    jax.block_until_ready(attn)
    ref_out, ref_attn = _reference(q, k, v, q.shape[-1], mask)
    assert jnp.allclose(out, ref_out, atol=atol, rtol=rtol)
    assert jnp.allclose(attn, ref_attn, atol=atol, rtol=rtol)


if __name__ == "__main__":
    key = jax.random.PRNGKey(0)

    # Small shapes consistent with the module: batch=2, seq=8, d_k=32.
    B, S, D = 2, 8, 32
    kq, kk, kv = jax.random.split(key, 3)
    q = jax.random.normal(kq, (B, S, D), dtype=jnp.float32)
    k = jax.random.normal(kk, (B, S, D), dtype=jnp.float32)
    v = jax.random.normal(kv, (B, S, D), dtype=jnp.float32)

    _check(q, k, v)                                        # padded-tail path
    causal = jnp.tril(jnp.ones((S, S), dtype=jnp.int32))
    _check(q, k, v, jnp.broadcast_to(causal, (B, S, S)))   # per-batch [B,S,S] mask

    # Multi-tile flash path: S=512 -> tq=tk=256, nq=nk=2 (dynamic weight slices).
    B2, S2, D2 = 2, 512, 64
    kq2, kk2, kv2 = jax.random.split(jax.random.PRNGKey(1), 3)
    q2 = jax.random.normal(kq2, (B2, S2, D2), dtype=jnp.float32)
    k2 = jax.random.normal(kk2, (B2, S2, D2), dtype=jnp.float32)
    v2 = jax.random.normal(kv2, (B2, S2, D2), dtype=jnp.float32)

    _check(q2, k2, v2)
    causal2 = jnp.tril(jnp.ones((S2, S2), dtype=jnp.int32))
    _check(q2, k2, v2, causal2)       # 2-D broadcast mask, not materialized per batch

    print("KERNEL_OK")
</pallas_src>

<mosaic_0001>
module attributes {stable_mosaic.version = 11 : i64} {
  func.func @kernel(%arg0: i32, %arg1: i32, %arg2: i32, %arg3: memref<1x128x32xf32, #tpu.memory_space<vmem>>, %arg4: memref<1x128x32xf32, #tpu.memory_space<vmem>>, %arg5: memref<1x128x32xf32, #tpu.memory_space<vmem>>, %arg6: memref<1x128x32xf32, #tpu.memory_space<vmem>>, %arg7: memref<1x128x128xf32, #tpu.memory_space<vmem>>, %arg8: memref<128x32xf32, #tpu.memory_space<vmem>>, %arg9: memref<128x1xf32, #tpu.memory_space<vmem>>, %arg10: memref<128x1xf32, #tpu.memory_space<vmem>>, %arg11: memref<128x32xf32, #tpu.memory_space<vmem>>) attributes {dimension_semantics = [#tpu.dimension_semantics<parallel>, #tpu.dimension_semantics<parallel>, #tpu.dimension_semantics<arbitrary>], iteration_bounds = array<i64: 2, 1, 1>, scalar_prefetch = 0 : i64, scratch_operands = 4 : i64, tpu.core_type = #tpu.core_type<tc>, window_params = [{transform_indices = @transform_0, window_bounds = array<i64: 1, 128, 32>}, {transform_indices = @transform_1, window_bounds = array<i64: 1, 128, 32>}, {transform_indices = @transform_2, window_bounds = array<i64: 1, 128, 32>}, {transform_indices = @transform_3, window_bounds = array<i64: 1, 128, 32>}, {transform_indices = @transform_4, window_bounds = array<i64: 1, 128, 128>}]} {
    %c0_i32 = arith.constant 0 : i32
    %0 = arith.cmpi eq, %arg2, %c0_i32 : i32
    %1 = arith.extui %0 : i1 to i32
    %c0_i32_0 = arith.constant 0 : i32
    %2 = arith.cmpi ne, %1, %c0_i32_0 : i32
    scf.if %2 {
      %c0_31 = arith.constant 0 : index
      %c0_32 = arith.constant 0 : index
      %c0_33 = arith.constant 0 : index
      %49 = vector.load %arg3[%c0_31, %c0_32, %c0_33] : memref<1x128x32xf32, #tpu.memory_space<vmem>>, vector<1x128x32xf32>
      %50 = vector.shape_cast %49 : vector<1x128x32xf32> to vector<128x32xf32>
      %cst_34 = arith.constant 0.176776692 : f32
      %51 = vector.broadcast %cst_34 : f32 to vector<128x32xf32>
      %52 = arith.mulf %50, %51 : vector<128x32xf32>
      %c0_35 = arith.constant 0 : index
      %c0_36 = arith.constant 0 : index
      %53 = vector.load %arg8[%c0_35, %c0_36] : memref<128x32xf32, #tpu.memory_space<vmem>>, vector<128x32xf32>
      tpu.vector_store %arg8[%c0_35, %c0_36], %52 {strides = array<i32>} : memref<128x32xf32, #tpu.memory_space<vmem>>, vector<128x32xf32>,
      %cst_37 = arith.constant 0xFF800000 : f32
      %54 = vector.broadcast %cst_37 : f32 to vector<128x1xf32>
      %c0_38 = arith.constant 0 : index
      %c0_39 = arith.constant 0 : index
      %55 = vector.load %arg9[%c0_38, %c0_39] : memref<128x1xf32, #tpu.memory_space<vmem>>, vector<128x1xf32>
      tpu.vector_store %arg9[%c0_38, %c0_39], %54 {strides = array<i32>} : memref<128x1xf32, #tpu.memory_space<vmem>>, vector<128x1xf32>,
      %cst_40 = arith.constant 0.000000e+00 : f32
      %56 = vector.broadcast %cst_40 : f32 to vector<128x1xf32>
      %c0_41 = arith.constant 0 : index
      %c0_42 = arith.constant 0 : index
      %57 = vector.load %arg10[%c0_41, %c0_42] : memref<128x1xf32, #tpu.memory_space<vmem>>, vector<128x1xf32>
      tpu.vector_store %arg10[%c0_41, %c0_42], %56 {strides = array<i32>} : memref<128x1xf32, #tpu.memory_space<vmem>>, vector<128x1xf32>,
      %cst_43 = arith.constant 0.000000e+00 : f32
      %58 = vector.broadcast %cst_43 : f32 to vector<128x32xf32>
      %c0_44 = arith.constant 0 : index
      %c0_45 = arith.constant 0 : index
      %59 = vector.load %arg11[%c0_44, %c0_45] : memref<128x32xf32, #tpu.memory_space<vmem>>, vector<128x32xf32>
      tpu.vector_store %arg11[%c0_44, %c0_45], %58 {strides = array<i32>} : memref<128x32xf32, #tpu.memory_space<vmem>>, vector<128x32xf32>,
    } else {
    }
    %c0 = arith.constant 0 : index
    %c0_1 = arith.constant 0 : index
    %3 = vector.load %arg8[%c0, %c0_1] : memref<128x32xf32, #tpu.memory_space<vmem>>, vector<128x32xf32>
    %c0_2 = arith.constant 0 : index
    %c0_3 = arith.constant 0 : index
    %c0_4 = arith.constant 0 : index
    %4 = vector.load %arg4[%c0_2, %c0_3, %c0_4] : memref<1x128x32xf32, #tpu.memory_space<vmem>>, vector<1x128x32xf32>
    %5 = vector.shape_cast %4 : vector<1x128x32xf32> to vector<128x32xf32>
    %c0_5 = arith.constant 0 : index
    %c0_6 = arith.constant 0 : index
    %c0_7 = arith.constant 0 : index
    %6 = vector.load %arg5[%c0_5, %c0_6, %c0_7] : memref<1x128x32xf32, #tpu.memory_space<vmem>>, vector<1x128x32xf32>
    %7 = vector.shape_cast %6 : vector<1x128x32xf32> to vector<128x32xf32>
    %cst = arith.constant dense<0.000000e+00> : vector<128x128xf32>
    %8 = tpu.matmul %3, %5, %cst {dimension_numbers = #tpu.dot_dimension_numbers<[1], [1], [0], [0], [0, 0, 1, 0], [], []>} : vector<128x32xf32>, vector<128x32xf32>, vector<128x128xf32> -> vector<128x128xf32>
    %c128_i32 = arith.constant 128 : i32
    %9 = arith.muli %arg2, %c128_i32 : i32
    %10 = tpu.iota {dimensions = array<i32: 1>} : vector<128x128xi32>
    %11 = vector.broadcast %9 : i32 to vector<128x128xi32>
    %12 = arith.addi %11, %10 : vector<128x128xi32>
    %c8_i32 = arith.constant 8 : i32
    %13 = vector.broadcast %c8_i32 : i32 to vector<128x128xi32>
    %14 = arith.cmpi slt, %12, %13 : vector<128x128xi32>
    %cst_8 = arith.constant 0xFF800000 : f32
    %15 = vector.broadcast %cst_8 : f32 to vector<128x128xf32>
    %16 = arith.select %14, %8, %15 : vector<128x128xi1>, vector<128x128xf32>
    %c0_9 = arith.constant 0 : index
    %c0_10 = arith.constant 0 : index
    %17 = vector.load %arg9[%c0_9, %c0_10] : memref<128x1xf32, #tpu.memory_space<vmem>>, vector<128x1xf32>
    %cst_11 = arith.constant dense<0xFF800000> : vector<128xf32>
    %18 = vector.multi_reduction <maximumf>, %16, %cst_11 [1] : vector<128x128xf32> to vector<128xf32>
    %19 = vector.shape_cast %18 : vector<128xf32> to vector<128x1xf32>
    %20 = arith.maximumf %17, %19 : vector<128x1xf32>
    %cst_12 = arith.constant 0xFF800000 : f32
    %21 = vector.broadcast %cst_12 : f32 to vector<128x1xf32>
    %22 = arith.cmpf oeq, %20, %21 : vector<128x1xf32>
    %cst_13 = arith.constant 0.000000e+00 : f32
    %23 = vector.broadcast %cst_13 : f32 to vector<128x1xf32>
    %24 = arith.select %22, %23, %20 : vector<128x1xi1>, vector<128x1xf32>
    %25 = arith.subf %17, %24 : vector<128x1xf32>
    %26 = math.exp %25 : vector<128x1xf32>
    %27 = vector.broadcast %24 : vector<128x1xf32> to vector<128x128xf32>
    %28 = arith.subf %16, %27 : vector<128x128xf32>
    %29 = math.exp %28 : vector<128x128xf32>
    %c0_14 = arith.constant 0 : index
    %c0_15 = arith.constant 0 : index
    %30 = vector.load %arg10[%c0_14, %c0_15] : memref<128x1xf32, #tpu.memory_space<vmem>>, vector<128x1xf32>
    %31 = arith.mulf %26, %30 : vector<128x1xf32>
    %cst_16 = arith.constant dense<0.000000e+00> : vector<128xf32>
    %32 = vector.multi_reduction <add>, %29, %cst_16 [1] : vector<128x128xf32> to vector<128xf32>
    %33 = vector.shape_cast %32 : vector<128xf32> to vector<128x1xf32>
    %34 = arith.addf %31, %33 : vector<128x1xf32>
    %c0_17 = arith.constant 0 : index
    %c0_18 = arith.constant 0 : index
    %35 = vector.load %arg10[%c0_17, %c0_18] : memref<128x1xf32, #tpu.memory_space<vmem>>, vector<128x1xf32>
    tpu.vector_store %arg10[%c0_17, %c0_18], %34 {strides = array<i32>} : memref<128x1xf32, #tpu.memory_space<vmem>>, vector<128x1xf32>,
    %c0_19 = arith.constant 0 : index
    %c0_20 = arith.constant 0 : index
    %36 = vector.load %arg11[%c0_19, %c0_20] : memref<128x32xf32, #tpu.memory_space<vmem>>, vector<128x32xf32>
    %37 = vector.broadcast %26 : vector<128x1xf32> to vector<128x32xf32>
    %38 = arith.mulf %37, %36 : vector<128x32xf32>
    %cst_21 = arith.constant dense<0.000000e+00> : vector<128x32xf32>
    %39 = tpu.matmul %29, %7, %cst_21 {dimension_numbers = #tpu.dot_dimension_numbers<[1], [0], [0], [1], [0, 0, 1, 1], [], []>} : vector<128x128xf32>, vector<128x32xf32>, vector<128x32xf32> -> vector<128x32xf32>
    %40 = arith.addf %38, %39 : vector<128x32xf32>
    %c0_22 = arith.constant 0 : index
    %c0_23 = arith.constant 0 : index
    %41 = vector.load %arg11[%c0_22, %c0_23] : memref<128x32xf32, #tpu.memory_space<vmem>>, vector<128x32xf32>
    tpu.vector_store %arg11[%c0_22, %c0_23], %40 {strides = array<i32>} : memref<128x32xf32, #tpu.memory_space<vmem>>, vector<128x32xf32>,
    %c0_24 = arith.constant 0 : index
    %c0_25 = arith.constant 0 : index
    %42 = vector.load %arg9[%c0_24, %c0_25] : memref<128x1xf32, #tpu.memory_space<vmem>>, vector<128x1xf32>
    tpu.vector_store %arg9[%c0_24, %c0_25], %20 {strides = array<i32>} : memref<128x1xf32, #tpu.memory_space<vmem>>, vector<128x1xf32>,
    %c0_26 = arith.constant 0 : index
    %c0_27 = arith.constant 0 : index
    %c0_28 = arith.constant 0 : index
    %43 = vector.load %arg7[%c0_26, %c0_27, %c0_28] : memref<1x128x128xf32, #tpu.memory_space<vmem>>, vector<1x128x128xf32>
    %44 = vector.shape_cast %43 : vector<1x128x128xf32> to vector<128x128xf32>
    %45 = vector.shape_cast %16 : vector<128x128xf32> to vector<1x128x128xf32>
    tpu.vector_store %arg7[%c0_26, %c0_27, %c0_28], %45 {strides = array<i32>} : memref<1x128x128xf32, #tpu.memory_space<vmem>>, vector<1x128x128xf32>,
    %c0_i32_29 = arith.constant 0 : i32
    %46 = arith.cmpi eq, %arg2, %c0_i32_29 : i32
    %47 = arith.extui %46 : i1 to i32
    %c0_i32_30 = arith.constant 0 : i32
    %48 = arith.cmpi ne, %47, %c0_i32_30 : i32
    scf.if %48 {
      %c0_31 = arith.constant 0 : index
      %c0_32 = arith.constant 0 : index
      %49 = vector.load %arg10[%c0_31, %c0_32] : memref<128x1xf32, #tpu.memory_space<vmem>>, vector<128x1xf32>
      %50 = tpu.reciprocal %49 {approx = true} : vector<128x1xf32> -> vector<128x1xf32>
      %51 = arith.mulf %49, %50 : vector<128x1xf32>
      %cst_33 = arith.constant 2.000000e+00 : f32
      %52 = vector.broadcast %cst_33 : f32 to vector<128x1xf32>
      %53 = arith.subf %52, %51 : vector<128x1xf32>
      %54 = arith.mulf %50, %53 : vector<128x1xf32>
      %c0_34 = arith.constant 0 : index
      %c0_35 = arith.constant 0 : index
      %55 = vector.load %arg11[%c0_34, %c0_35] : memref<128x32xf32, #tpu.memory_space<vmem>>, vector<128x32xf32>
      %56 = vector.broadcast %54 : vector<128x1xf32> to vector<128x32xf32>
      %57 = arith.mulf %55, %56 : vector<128x32xf32>
      %c0_36 = arith.constant 0 : index
      %c0_37 = arith.constant 0 : index
      %c0_38 = arith.constant 0 : index
      %58 = vector.load %arg6[%c0_36, %c0_37, %c0_38] : memref<1x128x32xf32, #tpu.memory_space<vmem>>, vector<1x128x32xf32>
      %59 = vector.shape_cast %58 : vector<1x128x32xf32> to vector<128x32xf32>
      %60 = vector.shape_cast %57 : vector<128x32xf32> to vector<1x128x32xf32>
      tpu.vector_store %arg6[%c0_36, %c0_37, %c0_38], %60 {strides = array<i32>} : memref<1x128x32xf32, #tpu.memory_space<vmem>>, vector<1x128x32xf32>,
      %c0_39 = arith.constant 0 : index
      %c0_40 = arith.constant 0 : index
      %61 = vector.load %arg9[%c0_39, %c0_40] : memref<128x1xf32, #tpu.memory_space<vmem>>, vector<128x1xf32>
      %cst_41 = arith.constant 0xFF800000 : f32
      %62 = vector.broadcast %cst_41 : f32 to vector<128x1xf32>
      %63 = arith.cmpf oeq, %61, %62 : vector<128x1xf32>
      %c0_42 = arith.constant 0 : index
      %c0_43 = arith.constant 0 : index
      %64 = vector.load %arg9[%c0_42, %c0_43] : memref<128x1xf32, #tpu.memory_space<vmem>>, vector<128x1xf32>
      %cst_44 = arith.constant 0.000000e+00 : f32
      %65 = vector.broadcast %cst_44 : f32 to vector<128x1xf32>
      %66 = arith.select %63, %65, %64 : vector<128x1xi1>, vector<128x1xf32>
      %c0_45 = arith.constant 0 : index
      %c0_46 = arith.constant 0 : index
      %c0_47 = arith.constant 0 : index
      %67 = vector.load %arg7[%c0_45, %c0_46, %c0_47] : memref<1x128x128xf32, #tpu.memory_space<vmem>>, vector<1x128x128xf32>
      %68 = vector.shape_cast %67 : vector<1x128x128xf32> to vector<128x128xf32>
      %69 = vector.broadcast %66 : vector<128x1xf32> to vector<128x128xf32>
      %70 = arith.subf %68, %69 : vector<128x128xf32>
      %71 = math.exp %70 : vector<128x128xf32>
      %72 = vector.broadcast %54 : vector<128x1xf32> to vector<128x128xf32>
      %73 = arith.mulf %71, %72 : vector<128x128xf32>
      %c0_48 = arith.constant 0 : index
      %c0_49 = arith.constant 0 : index
      %c0_50 = arith.constant 0 : index
      %74 = vector.load %arg7[%c0_48, %c0_49, %c0_50] : memref<1x128x128xf32, #tpu.memory_space<vmem>>, vector<1x128x128xf32>
      %75 = vector.shape_cast %74 : vector<1x128x128xf32> to vector<128x128xf32>
      %76 = vector.shape_cast %73 : vector<128x128xf32> to vector<1x128x128xf32>
      tpu.vector_store %arg7[%c0_48, %c0_49, %c0_50], %76 {strides = array<i32>} : memref<1x128x128xf32, #tpu.memory_space<vmem>>, vector<1x128x128xf32>,
    } else {
    }
    return
  }
  func.func @transform_0(%arg0: i32, %arg1: i32, %arg2: i32) -> (i32, i32, i32) {
    %c0_i32 = arith.constant 0 : i32
    %c0_i32_0 = arith.constant 0 : i32
    return %arg0, %arg1, %c0_i32 : i32, i32, i32
  }
  func.func @transform_1(%arg0: i32, %arg1: i32, %arg2: i32) -> (i32, i32, i32) {
    %c0_i32 = arith.constant 0 : i32
    %c0_i32_0 = arith.constant 0 : i32
    return %arg0, %arg2, %c0_i32 : i32, i32, i32
  }
  func.func @transform_2(%arg0: i32, %arg1: i32, %arg2: i32) -> (i32, i32, i32) {
    %c0_i32 = arith.constant 0 : i32
    %c0_i32_0 = arith.constant 0 : i32
    return %arg0, %arg2, %c0_i32 : i32, i32, i32
  }
  func.func @transform_3(%arg0: i32, %arg1: i32, %arg2: i32) -> (i32, i32, i32) {
    %c0_i32 = arith.constant 0 : i32
    %c0_i32_0 = arith.constant 0 : i32
    return %arg0, %arg1, %c0_i32 : i32, i32, i32
  }
  func.func @transform_4(%arg0: i32, %arg1: i32, %arg2: i32) -> (i32, i32, i32) {
    %c0_i32 = arith.constant 0 : i32
    %c0_i32_0 = arith.constant 0 : i32
    return %arg0, %arg1, %c0_i32 : i32, i32, i32
  }
}

</mosaic_0001>

<bundles_post_ra>
// kernel: tpu_custom_call.1
= control target key start
LH: loop header
LB: loop body
LE: loop exit
PB: predicated region body
PF: predicated region fallthrough
CT: control target
= control target key end

     0   :  { %10 = vsyncpa [#allocation7], 0  ;;  %s3474_s0 = inlined_call_operand.vmem [shape: f32[2,128,32], index: 0, kind: input, shape index: {}]   ;;  %s3475_s1 = inlined_call_operand.vmem [shape: f32[2,128,32], index: 1, kind: input, shape index: {}]   ;;  %s3476_s2 = inlined_call_operand.vmem [shape: f32[2,128,32], index: 2, kind: input, shape index: {}]   ;;  %s3477_s3 = inlined_call_operand.vmem [shape: f32[2,128,32], index: 3, kind: output, shape index: {0}]   ;;  %s3478_s4 = inlined_call_operand.hbm [shape: f32[2,128,128], index: 4, kind: output, shape index: {1}]  }
   0x1   :  { %12 = vsyncpa [#allocation7 + $0x1], 0  ;;  %s2666_s15 = smov 0   ;;  %s2668_s16 = smov 0  }
   0x2   :  { %s2670_s17 = smov 0   ;;  %s2672_s18 = smov 0  }
   0x3   :  { %s2674_s19 = smov 0   ;;  %s2676_s20 = smov 0  }
   0x4 LB: > { %s2053_s21 = sadd.s32 4294967295, %s2633_s20   ;;  %s2054_s22 = sadd.s32 4294967294, %s2633_s20   ;;  %s2633_s20 = sphi %s2676_s20, %s18_s20   ;;  %s2629_s19 = sphi %s2674_s19, %s3487_s19   ;;  %s2625_s18 = sphi %s2672_s18, %s3486_s18   ;;  %s2621_s17 = sphi %s2670_s17, %s3485_s17   ;;  %s2617_s16 = sphi %s2668_s16, %s3484_s16   ;;  %s2613_s15 = sphi %s2666_s15, %s3483_s15  }
   0x5   : > { %s37_s23 = sadd.s32 1, %s2629_s19  ;;  %s158_s24 = sadd.s32 1, %s2621_s17 }
   0x6   : > { %p39_p0 = scmp.ge.s32.totalorder %s37_s23, 2  ;;  %p168_p1 = scmp.ne.s32.totalorder %s2621_s17, %s2617_s16 }
   0x7   : > { %p169_p2 = scmp.eq.s32.totalorder %s2053_s21, 1  ;;  %p174_p3 = scmp.ne.s32.totalorder %s2617_s16, %s2613_s15 }
   0x8   : > { %s3489_s23 = smov (%p39_p0, %s37_s23), 0  ;;  %p175_p5 = scmp.eq.s32.totalorder %s2054_s22, 1 }
   0x9   : > { %p2706_p4 = por %p169_p2, %p168_p1  ;;  %s153_s26 = ssub.s32 %s2629_s19, %s3489_s23 }
   0xa   : > { %p2057_p6 = scmp.ge.s32.totalorder %s2633_s20, 1  ;;  %p156_p7 = scmp.eq.s32.totalorder %s153_s26, 0 }
   0xb   : > { %p2713_p8 = por %p175_p5, %p174_p3  ;;  %p232_p9 = scmp.lt.s32.totalorder %s2633_s20, 3 }
   0xc   : > { %s2719_s28 = scalar_select %p156_p7, %s2621_s17, %s158_s24  }
   0xd   : > { %p233_p10 = pnand %p2057_p6, %p232_p9 }
   0xe   : > { %p290_p11 = scmp.lt.s32.totalorder (!%p233_p10), %s2625_s18, 1  ;;  %vm366_vm0 = vcmask (!%p233_p10), 261120   ;;  %vm383_vm2 = vcmask (!%p233_p10), 7168   ;;  %s286_s11 = sand.u32 (!%p233_p10), 1, %s2617_s16  }
   0xf   : > { %236 = sbr.rel (%p233_p10) target bundleno = 954 (0x3ba), region = 32  ;;  %vm2733_vm1 = vmpackc.low (!%p233_p10), %vm366_vm0, %vm366_vm0  ;;  %s2058_s12 = sshll.u32 (!%p233_p10), %s286_s11, 7 }
  0x10   : > { %s2865_s13 = scalar_lea.vmem (!%p233_p10), [#allocation6], %s2058_s12 }
  0x11   : > { %s1898_s5 = sshll.u32 (!%p233_p10), %s2865_s13, 4  ;;  %s3421_s5 = int_to_ptr.vmem [resolvable:$true] %s1898_s5 }
  0x12   : > { %s2555_s9 = scalar_lea.vmem (!%p233_p10), %s3421_s5, 2048 }
  0x13   : > { %p2556_p12 = scmp.ne.s32.totalorder (!%p233_p10), %s3421_s5, %s2555_s9 }
  0x15   : > { %p2557_p13 = pnand (!%p233_p10), %p2556_p12, %p2706_p4 }
  0x16   : > { %s291_s29 = scalar_select %p290_p11, %s2625_s18, 1 }
  0x17   : > { %p2558_p0 = pneg %p2557_p13 }
  0x18   : > { %s2723_s30 = sshll.u32 %s291_s29, 7 }
  0x19   : > { %s2729_s7 = scalar_lea.vmem %s3475_s1, %s2723_s30  ;;  %s2745_s10 = scalar_lea.vmem %s3474_s0, %s2723_s30 }
  0x1a   : > { %v448_v1 = vld [vmem:[%s2729_s7] sm:$0xff]  ;;  %v449_v2 = vld [vmem:[%s2729_s7 + $0x8] sm:$0xff]  ;;  %v450_v3 = vld [vmem:[%s2729_s7 + $0x10] sm:$0xff]  ;;  %s3011_s22 = scalar_lea.vmem %s3476_s2, %s2723_s30  ;;  %s3347_s29 = scalar_lea.vmem %s3477_s3, %s2723_s30 }
  0x1b   : > { %v2285_v4 = vpack.c.bf16 %v449_v2, %v448_v1  ;;  %v451_v5 = vld [vmem:[%s2729_s7 + $0x18] sm:$0xff]  ;;  %v452_v7 = vld [vmem:[%s2729_s7 + $0x20] sm:$0xff]  ;;  %v453_v8 = vld [vmem:[%s2729_s7 + $0x28] sm:$0xff]  ;;  %s2108_s30 = sshll.u32 %s2625_s18, 11  ;;  %s3428_s18 = scalar_lea.sflag [#allocation7], %s286_s11 }
  0x1c   : > { %v2291_v6 = vpack.c.bf16 %v451_v5, %v450_v3  ;;  %v334_v9 = vld [vmem:[%s2745_s10] sm:$0xff]  ;;  %v335_v10 = vld [vmem:[%s2745_s10 + $0x8] sm:$0xff]  ;;  %v336_v13 = vld [vmem:[%s2745_s10 + $0x10] sm:$0xff]  ;;  %v2297_v23 = vpack.c.bf16 %v453_v8, %v452_v7  ;;  %s3419_s8 = scalar_lea.hbm %s3478_s4, %s2108_s30 }
  0x1d   : > { %2287 = vmatprep.subr.msk.bf16.mxu0 %vm2733_vm1, %v2285_v4  ;;  %v350_v11 = vmul.f32 0.17677669, %v334_v9  ;;  %v351_v12 = vmul.f32 0.17677669, %v335_v10  ;;  %v337_v14 = vld [vmem:[%s2745_s10 + $0x18] sm:$0xff]  ;;  %v338_v17 = vld [vmem:[%s2745_s10 + $0x20] sm:$0xff]  ;;  %v723_v10 = vlaneseq }
  0x1e   : > { %2290 = vmatpush3.bf16.xpose.msk.msra.mxu0 %vm2733_vm1, %v2285_v4  ;;  %v352_v15 = vmul.f32 0.17677669, %v336_v13  ;;  %v353_v16 = vmul.f32 0.17677669, %v337_v14  ;;  %v339_v18 = vld [vmem:[%s2745_s10 + $0x28] sm:$0xff]  ;;  %v340_v21 = vld [vmem:[%s2745_s10 + $0x30] sm:$0xff] }
  0x1f   : > { %2293 = vmatprep.subr.msk.bf16.mxu0 %vm2733_vm1, %v2291_v6  ;;  %367 = vst.msk [vmem:[#allocation2] sm:$0xff] %vm366_vm0, %v350_v11  ;;  %368 = vst.msk [vmem:[#allocation2 + $0x8] sm:$0xff] %vm366_vm0, %v351_v12  ;;  %v354_v19 = vmul.f32 0.17677669, %v338_v17  ;;  %v355_v20 = vmul.f32 0.17677669, %v339_v18 }
  0x20   : > { %v341_v22 = vld [vmem:[%s2745_s10 + $0x38] sm:$0xff]  ;;  %369 = vst.msk [vmem:[#allocation2 + $0x10] sm:$0xff] %vm366_vm0, %v352_v15  ;;  %370 = vst.msk [vmem:[#allocation2 + $0x18] sm:$0xff] %vm366_vm0, %v353_v16  ;;  %v356_v24 = vmul.f32 0.17677669, %v340_v21  ;;  %v342_v26 = vld [vmem:[%s2745_s10 + $0x40] sm:$0xff] }
  0x21   : > { %v357_v25 = vmul.f32 0.17677669, %v341_v22  ;;  %v343_v27 = vld [vmem:[%s2745_s10 + $0x48] sm:$0xff]  ;;  %371 = vst.msk [vmem:[#allocation2 + $0x20] sm:$0xff] %vm366_vm0, %v354_v19  ;;  %372 = vst.msk [vmem:[#allocation2 + $0x28] sm:$0xff] %vm366_vm0, %v355_v20  ;;  %v344_v30 = vld [vmem:[%s2745_s10 + $0x50] sm:$0xff] }
  0x22   : > { %v358_v28 = vmul.f32 0.17677669, %v342_v26  ;;  %v359_v29 = vmul.f32 0.17677669, %v343_v27  ;;  %v345_v31 = vld [vmem:[%s2745_s10 + $0x58] sm:$0xff]  ;;  %373 = vst.msk [vmem:[#allocation2 + $0x30] sm:$0xff] %vm366_vm0, %v356_v24 }
  0x23   : > { %374 = vst.msk [vmem:[#allocation2 + $0x38] sm:$0xff] %vm366_vm0, %v357_v25  ;;  %v360_v32 = vmul.f32 0.17677669, %v344_v30  ;;  %v361_v33 = vmul.f32 0.17677669, %v345_v31  ;;  %v346_v34 = vld [vmem:[%s2745_s10 + $0x60] sm:$0xff] }
  0x24   : > { %v347_v35 = vld [vmem:[%s2745_s10 + $0x68] sm:$0xff]  ;;  %375 = vst.msk [vmem:[#allocation2 + $0x40] sm:$0xff] %vm366_vm0, %v358_v28  ;;  %376 = vst.msk [vmem:[#allocation2 + $0x48] sm:$0xff] %vm366_vm0, %v359_v29  ;;  %v362_v36 = vmul.f32 0.17677669, %v346_v34  ;;  %v348_v38 = vld [vmem:[%s2745_s10 + $0x70] sm:$0xff] }
  0x25   : > { %v363_v37 = vmul.f32 0.17677669, %v347_v35  ;;  %v349_v39 = vld [vmem:[%s2745_s10 + $0x78] sm:$0xff]  ;;  %377 = vst.msk [vmem:[#allocation2 + $0x50] sm:$0xff] %vm366_vm0, %v360_v32  ;;  %378 = vst.msk [vmem:[#allocation2 + $0x58] sm:$0xff] %vm366_vm0, %v361_v33  ;;  %v454_v42 = vld [vmem:[%s2729_s7 + $0x30] sm:$0xff] }
  0x26   : > { %2296 = vmatpush3.bf16.xpose.msk.msra.mxu0 %vm2733_vm1, %v2291_v6  ;;  %v364_v40 = vmul.f32 0.17677669, %v348_v38  ;;  %v365_v41 = vmul.f32 0.17677669, %v349_v39  ;;  %v455_v43 = vld [vmem:[%s2729_s7 + $0x38] sm:$0xff]  ;;  %379 = vst.msk [vmem:[#allocation2 + $0x60] sm:$0xff] %vm366_vm0, %v362_v36 }
  0x27   : > { %2299 = vmatprep.subr.msk.bf16.mxu0 %vm2733_vm1, %v2297_v23  ;;  %380 = vst.msk [vmem:[#allocation2 + $0x68] sm:$0xff] %vm366_vm0, %v363_v37  ;;  %v432_v44 = vld [vmem:[#allocation2] sm:$0xff]  ;;  %v2303_v45 = vpack.c.bf16 %v455_v43, %v454_v42  ;;  %v457_v47 = vld [vmem:[%s2729_s7 + $0x48] sm:$0xff]  ;;  %v458_v49 = vld [vmem:[%s2729_s7 + $0x50] sm:$0xff]  ;;  %v2635_v9 = vmov -inf   ;;  %v2856_v11 = vand.u32 127, %v723_v10 }
  0x28   : > { %381 = vst.msk [vmem:[#allocation2 + $0x70] sm:$0xff] %vm366_vm0, %v364_v40  ;;  %382 = vst.msk [vmem:[#allocation2 + $0x78] sm:$0xff] %vm366_vm0, %v365_v41  ;;  %2205 = vmatprep.mubr.msk.f32.mxu0 %vm366_vm0, %v432_v44  ;;  %v456_v46 = vld [vmem:[%s2729_s7 + $0x40] sm:$0xff]  ;;  %v459_v50 = vld [vmem:[%s2729_s7 + $0x58] sm:$0xff]  ;;  %v2636_v33 = vmov 0   ;;  %v2637_v42 = vmov 0.0  }
  0x29   : > { %v2309_v48 = vpack.c.bf16 %v457_v47, %v456_v46  ;;  %v2315_v51 = vpack.c.bf16 %v459_v50, %v458_v49  ;;  %v460_v52 = vld [vmem:[%s2729_s7 + $0x60] sm:$0xff]  ;;  %v461_v53 = vld [vmem:[%s2729_s7 + $0x68] sm:$0xff]  ;;  %v462_v55 = vld [vmem:[%s2729_s7 + $0x70] sm:$0xff]  ;;  %384 = vst.msk [vmem:[#allocation3] sm:$0xff] %vm383_vm2, %v2635_v9  ;;  %vm727_vm3 = vcmp.lt.s32.totalorder %v2856_v11, 8  ;;  %2425 = vset.pattern.permute.xlu0 %v2636_v33  ;;  %2426 = vset.pattern.permute.xlu1 %v2636_v33  ;;  %s2638_s10 = smov [#allocation6]  }
  0x2a   : > { %v2321_v54 = vpack.c.bf16 %v461_v53, %v460_v52  ;;  %v463_v56 = vld [vmem:[%s2729_s7 + $0x78] sm:$0xff]  ;;  %v433_v58 = vld [vmem:[#allocation2 + $0x8] sm:$0xff]  ;;  %v434_v59 = vld [vmem:[#allocation2 + $0x10] sm:$0xff]  ;;  %385 = vst.msk [vmem:[#allocation3 + $0x8] sm:$0xff] %vm383_vm2, %v2635_v9  ;;  %s2559_s12 = sshll.u32 %s2638_s10, 4  ;;  %s2560_s12 = int_to_ptr.vmem [resolvable:$false] %s2559_s12 }
  0x2b   : > { %v2327_v57 = vpack.c.bf16 %v463_v56, %v462_v55  ;;  %v435_v60 = vld [vmem:[#allocation2 + $0x18] sm:$0xff]  ;;  %v436_v61 = vld [vmem:[#allocation2 + $0x20] sm:$0xff]  ;;  %v437_v62 = vld [vmem:[#allocation2 + $0x28] sm:$0xff]  ;;  %386 = vst.msk [vmem:[#allocation3 + $0x10] sm:$0xff] %vm383_vm2, %v2635_v9  ;;  %s2561_s14 = scalar_lea.vmem %s2560_s12, 4096  ;;  %p2562_p1 = scmp.lt.s32.totalorder %s3421_s5, %s2560_s12 }
  0x2c   : > { %v438_v63 = vld [vmem:[#allocation2 + $0x30] sm:$0xff]  ;;  %v439_v0 = vld [vmem:[#allocation2 + $0x38] sm:$0xff]  ;;  %v440_v1 = vld [vmem:[#allocation2 + $0x40] sm:$0xff]  ;;  %387 = vst.msk [vmem:[#allocation3 + $0x18] sm:$0xff] %vm383_vm2, %v2635_v9  ;;  %p2563_p2 = scmp.lt.s32.totalorder %s2561_s14, %s2555_s9 }
  0x2d   : > { %v441_v2 = vld [vmem:[#allocation2 + $0x48] sm:$0xff]  ;;  %v442_v3 = vld [vmem:[#allocation2 + $0x50] sm:$0xff]  ;;  %v443_v4 = vld [vmem:[#allocation2 + $0x58] sm:$0xff]  ;;  %388 = vst.msk [vmem:[#allocation3 + $0x20] sm:$0xff] %vm383_vm2, %v2635_v9 }
  0x2e   : > { %2302 = vmatpush3.bf16.xpose.msk.msra.mxu0 %vm2733_vm1, %v2297_v23  ;;  %v444_v5 = vld [vmem:[#allocation2 + $0x60] sm:$0xff]  ;;  %v445_v6 = vld [vmem:[#allocation2 + $0x68] sm:$0xff]  ;;  %389 = vst.msk [vmem:[#allocation3 + $0x28] sm:$0xff] %vm383_vm2, %v2635_v9  ;;  %390 = vst.msk [vmem:[#allocation3 + $0x30] sm:$0xff] %vm383_vm2, %v2635_v9  ;;  %p2564_p3 = por %p2563_p2, %p2562_p1 }
  0x2f   : > { %2305 = vmatprep.subr.msk.bf16.mxu0 %vm2733_vm1, %v2303_v45  ;;  %v446_v7 = vld [vmem:[#allocation2 + $0x70] sm:$0xff]  ;;  %v447_v8 = vld [vmem:[#allocation2 + $0x78] sm:$0xff]  ;;  %391 = vst.msk [vmem:[#allocation3 + $0x38] sm:$0xff] %vm383_vm2, %v2635_v9  ;;  %392 = vst.msk [vmem:[#allocation3 + $0x40] sm:$0xff] %vm383_vm2, %v2635_v9 }
  0x30   : > { %393 = vst.msk [vmem:[#allocation3 + $0x48] sm:$0xff] %vm383_vm2, %v2635_v9  ;;  %394 = vst.msk [vmem:[#allocation3 + $0x50] sm:$0xff] %vm383_vm2, %v2635_v9  ;;  %v464_v46 = vld [vmem:[%s3011_s22] sm:$0xff]  ;;  %v465_v47 = vld [vmem:[%s3011_s22 + $0x8] sm:$0xff]  ;;  %p2565_p5 = pnand %p2564_p3, %p2558_p0 }
  0x31   : > { %395 = vst.msk [vmem:[#allocation3 + $0x58] sm:$0xff] %vm383_vm2, %v2635_v9  ;;  %396 = vst.msk [vmem:[#allocation3 + $0x60] sm:$0xff] %vm383_vm2, %v2635_v9  ;;  %v2333_v49 = vpack.c.bf16 %v465_v47, %v464_v46  ;;  %v467_v50 = vld [vmem:[%s3011_s22 + $0x18] sm:$0xff]  ;;  %v468_v52 = vld [vmem:[%s3011_s22 + $0x20] sm:$0xff] }
  0x32   : > { %397 = vst.msk [vmem:[#allocation3 + $0x68] sm:$0xff] %vm383_vm2, %v2635_v9  ;;  %398 = vst.msk [vmem:[#allocation3 + $0x70] sm:$0xff] %vm383_vm2, %v2635_v9  ;;  %v469_v53 = vld [vmem:[%s3011_s22 + $0x28] sm:$0xff]  ;;  %v470_v55 = vld [vmem:[%s3011_s22 + $0x30] sm:$0xff] }
  0x33   : > { %399 = vst.msk [vmem:[#allocation3 + $0x78] sm:$0xff] %vm383_vm2, %v2635_v9  ;;  %400 = vst.msk [vmem:[#allocation4] sm:$0xff] %vm383_vm2, %v2637_v42  ;;  %2334 = vmatprep.subr.bf16.mxu1 %v2333_v49  ;;  %v471_v56 = vld [vmem:[%s3011_s22 + $0x38] sm:$0xff] }
  0x34   : > { %416 = vst.msk [vmem:[#allocation5] sm:$0xff] %vm366_vm0, %v2637_v42  ;;  %417 = vst.msk [vmem:[#allocation5 + $0x8] sm:$0xff] %vm366_vm0, %v2637_v42  ;;  %2336 = vmatpush3.bf16.msra.mxu1 %v2333_v49 }
  0x35   : > { %401 = vst.msk [vmem:[#allocation4 + $0x8] sm:$0xff] %vm383_vm2, %v2637_v42  ;;  %402 = vst.msk [vmem:[#allocation4 + $0x10] sm:$0xff] %vm383_vm2, %v2637_v42 }
  0x36   : > { %2308 = vmatpush3.bf16.xpose.msk.msra.mxu0 %vm2733_vm1, %v2303_v45  ;;  %403 = vst.msk [vmem:[#allocation4 + $0x18] sm:$0xff] %vm383_vm2, %v2637_v42  ;;  %404 = vst.msk [vmem:[#allocation4 + $0x20] sm:$0xff] %vm383_vm2, %v2637_v42  ;;  %v3059_v33 = vld [vmem:[#allocation3 + $0x38] sm:$0xff] }
  0x37   : > { %2311 = vmatprep.subr.msk.bf16.mxu0 %vm2733_vm1, %v2309_v48  ;;  %405 = vst.msk [vmem:[#allocation4 + $0x28] sm:$0xff] %vm383_vm2, %v2637_v42  ;;  %406 = vst.msk [vmem:[#allocation4 + $0x30] sm:$0xff] %vm383_vm2, %v2637_v42  ;;  %v3075_v49 = vld [vmem:[#allocation3 + $0x48] sm:$0xff] }
  0x38   : > { %407 = vst.msk [vmem:[#allocation4 + $0x38] sm:$0xff] %vm383_vm2, %v2637_v42  ;;  %408 = vst.msk [vmem:[#allocation4 + $0x40] sm:$0xff] %vm383_vm2, %v2637_v42 }
  0x39   : > { %409 = vst.msk [vmem:[#allocation4 + $0x48] sm:$0xff] %vm383_vm2, %v2637_v42  ;;  %410 = vst.msk [vmem:[#allocation4 + $0x50] sm:$0xff] %vm383_vm2, %v2637_v42 }
  0x3a   : > { %411 = vst.msk [vmem:[#allocation4 + $0x58] sm:$0xff] %vm383_vm2, %v2637_v42  ;;  %412 = vst.msk [vmem:[#allocation4 + $0x60] sm:$0xff] %vm383_vm2, %v2637_v42 }
  0x3b   : > { %413 = vst.msk [vmem:[#allocation4 + $0x68] sm:$0xff] %vm383_vm2, %v2637_v42  ;;  %414 = vst.msk [vmem:[#allocation4 + $0x70] sm:$0xff] %vm383_vm2, %v2637_v42 }
  0x3c   : > { %415 = vst.msk [vmem:[#allocation4 + $0x78] sm:$0xff] %vm383_vm2, %v2637_v42 }
  0x3d   : > { %418 = vst.msk [vmem:[#allocation5 + $0x10] sm:$0xff] %vm366_vm0, %v2637_v42  ;;  %419 = vst.msk [vmem:[#allocation5 + $0x18] sm:$0xff] %vm366_vm0, %v2637_v42 }
  0x3e   : > { %2314 = vmatpush3.bf16.xpose.msk.msra.mxu0 %vm2733_vm1, %v2309_v48  ;;  %420 = vst.msk [vmem:[#allocation5 + $0x20] sm:$0xff] %vm366_vm0, %v2637_v42  ;;  %421 = vst.msk [vmem:[#allocation5 + $0x28] sm:$0xff] %vm366_vm0, %v2637_v42  ;;  %v466_v48 = vld [vmem:[%s3011_s22 + $0x10] sm:$0xff] }
  0x3f   : > { %2317 = vmatprep.subr.msk.bf16.mxu0 %vm2733_vm1, %v2315_v51  ;;  %422 = vst.msk [vmem:[#allocation5 + $0x30] sm:$0xff] %vm366_vm0, %v2637_v42  ;;  %423 = vst.msk [vmem:[#allocation5 + $0x38] sm:$0xff] %vm366_vm0, %v2637_v42 }
  0x40   : > { %424 = vst.msk [vmem:[#allocation5 + $0x40] sm:$0xff] %vm366_vm0, %v2637_v42  ;;  %425 = vst.msk [vmem:[#allocation5 + $0x48] sm:$0xff] %vm366_vm0, %v2637_v42 }
  0x41   : > { %426 = vst.msk [vmem:[#allocation5 + $0x50] sm:$0xff] %vm366_vm0, %v2637_v42  ;;  %427 = vst.msk [vmem:[#allocation5 + $0x58] sm:$0xff] %vm366_vm0, %v2637_v42 }
  0x42   : > { %428 = vst.msk [vmem:[#allocation5 + $0x60] sm:$0xff] %vm366_vm0, %v2637_v42  ;;  %429 = vst.msk [vmem:[#allocation5 + $0x68] sm:$0xff] %vm366_vm0, %v2637_v42 }
  0x43   : > { %430 = vst.msk [vmem:[#allocation5 + $0x70] sm:$0xff] %vm366_vm0, %v2637_v42  ;;  %431 = vst.msk [vmem:[#allocation5 + $0x78] sm:$0xff] %vm366_vm0, %v2637_v42 }
  0x46   : > { %2320 = vmatpush3.bf16.xpose.msk.msra.mxu0 %vm2733_vm1, %v2315_v51  ;;  %v2337_v51 = vpack.c.bf16 %v467_v50, %v466_v48 }
  0x47   : > { %2323 = vmatprep.subr.msk.bf16.mxu0 %vm2733_vm1, %v2321_v54 }
  0x48   : > { %2338 = vmatprep.subr.bf16.mxu1 %v2337_v51 }
  0x49   : > { %2340 = vmatpush3.bf16.msra.mxu1 %v2337_v51  ;;  %v478_v51 = vld [vmem:[%s3011_s22 + $0x70] sm:$0xff] }
  0x4e   : > { %2326 = vmatpush3.bf16.xpose.msk.msra.mxu0 %vm2733_vm1, %v2321_v54  ;;  %v2341_v54 = vpack.c.bf16 %v469_v53, %v468_v52  ;;  %v479_v52 = vld [vmem:[%s3011_s22 + $0x78] sm:$0xff] }
  0x4f   : > { %2329 = vmatprep.subr.msk.bf16.mxu0 %vm2733_vm1, %v2327_v57 }
  0x50   : > { %2342 = vmatprep.subr.bf16.mxu1 %v2341_v54 }
  0x51   : > { %2344 = vmatpush3.bf16.msra.mxu1 %v2341_v54  ;;  %v3083_v54 = vld [vmem:[#allocation3 + $0x50] sm:$0xff] }
  0x56   : > { %2332 = vmatpush3.bf16.xpose.msk.msra.mxu0 %vm2733_vm1, %v2327_v57  ;;  %v2345_v57 = vpack.c.bf16 %v471_v56, %v470_v55  ;;  %v2361_v55 = vpack.c.bf16 %v479_v52, %v478_v51 }
  0x58   : > { %2346 = vmatprep.subr.bf16.mxu1 %v2345_v57 }
  0x59   : > { %2348 = vmatpush3.bf16.msra.mxu1 %v2345_v57 }
  0x5d   : > { %2206 = vmatmul.mubr.msk.f32.vlgmr.msra.gmra.mrb[0].mxu0 %vm366_vm0, %v433_v58  ;;  %v3021_v58 = vld [vmem:[#allocation3] sm:$0xff] }
  0x5e   : > { %2208 = vmatprep.mubr.msk.f32.mxu0 %vm366_vm0, %v434_v59 }
  0x61   : > { %2209 = vmatmul.mubr.msk.f32.gmra.mrb[2].mxu0 %vm366_vm0, %v435_v60 }
  0x62   : > { %2211 = vmatprep.mubr.msk.f32.mxu0 %vm366_vm0, %v436_v61  ;;  %v3024_v61 = vld [vmem:[#allocation3 + $0x18] sm:$0xff] }
  0x65   : > { %2212 = vmatmul.mubr.msk.f32.gmra.mrb[4].mxu0 %vm366_vm0, %v437_v62  ;;  %v3026_v62 = vld [vmem:[#allocation3 + $0x8] sm:$0xff] }
  0x66   : > { %2214 = vmatprep.mubr.msk.f32.mxu0 %vm366_vm0, %v438_v63 }
  0x69   : > { %2215 = vmatmul.mubr.msk.f32.gmra.mrb[6].mxu0 %vm366_vm0, %v439_v0 }
  0x6a   : > { %2217 = vmatprep.mubr.msk.f32.mxu0 %vm366_vm0, %v440_v1 }
  0x6d   : > { %2218 = vmatmul.mubr.msk.f32.gmra.mrb[8].mxu0 %vm366_vm0, %v441_v2 }
  0x6e   : > { %2220 = vmatprep.mubr.msk.f32.mxu0 %vm366_vm0, %v442_v3 }
  0x71   : > { %2221 = vmatmul.mubr.msk.f32.gmra.mrb[10].mxu0 %vm366_vm0, %v443_v4  ;;  %v3034_v4 = vld [vmem:[#allocation3 + $0x10] sm:$0xff] }
  0x72   : > { %2223 = vmatprep.mubr.msk.f32.mxu0 %vm366_vm0, %v444_v5  ;;  %v472_v5 = vld [vmem:[%s3011_s22 + $0x40] sm:$0xff] }
  0x75   : > { %2224 = vmatmul.mubr.msk.f32.gmra.mrb[12].mxu0 %vm366_vm0, %v445_v6  ;;  %v473_v6 = vld [vmem:[%s3011_s22 + $0x48] sm:$0xff] }
  0x76   : > { %2226 = vmatprep.mubr.msk.f32.mxu0 %vm366_vm0, %v446_v7  ;;  %v3039_v7 = vld [vmem:[#allocation3 + $0x20] sm:$0xff] }
  0x79   : > { %2227 = vmatmul.mubr.msk.f32.gmra.mrb[14].mxu0 %vm366_vm0, %v447_v8  ;;  %v2349_v8 = vpack.c.bf16 %v473_v6, %v472_v5 }
  0x7b   : > { %2350 = vmatprep.subr.bf16.mxu1 %v2349_v8 }
  0x7c   : > { %2352 = vmatpush3.bf16.msra.mxu1 %v2349_v8 }
 0x130   : > { %v2207_v12 = vpop.f32.mrb[0].mxu0 }
 0x131   : > { %v2863_v13 = vsel %vm727_vm3, %v2207_v12, -inf  ;;  %v643_v14 = vpop.f32.mrb[1].mxu0 }
 0x132   : > { %1419 = vst [vmem:[%s2865_s13 + $0x8] sm:$0xff] %v2863_v13  ;;  %v2871_v15 = vsel %vm727_vm3, %v643_v14, -inf  ;;  %v3046_v14 = vld [vmem:[#allocation3 + $0x28] sm:$0xff] }
 0x133   : > { %1418 = vst [vmem:[%s2865_s13] sm:$0xff] %v2871_v15  ;;  %760 = vmax.xlane.f32.xlu0 %v2871_v15 }
 0x134   : > { %v2210_v16 = vpop.f32.mrb[2].mxu0 }
 0x135   : > { %v2878_v17 = vsel %vm727_vm3, %v2210_v16, -inf  ;;  %v653_v18 = vpop.f32.mrb[3].mxu0 }
 0x136   : > { %1421 = vst [vmem:[%s2865_s13 + $0x18] sm:$0xff] %v2878_v17  ;;  %766 = vmax.xlane.f32.xlu1 %v2878_v17  ;;  %v2885_v19 = vsel %vm727_vm3, %v653_v18, -inf  ;;  %v474_v18 = vld [vmem:[%s3011_s22 + $0x50] sm:$0xff] }
 0x137   : > { %762 = vmax.xlane.f32.xlu0 %v2863_v13  ;;  %1420 = vst [vmem:[%s2865_s13 + $0x10] sm:$0xff] %v2885_v19 }
 0x138   : > { %v2213_v20 = vpop.f32.mrb[4].mxu0 }
 0x139   : > { %v2892_v21 = vsel %vm727_vm3, %v2213_v20, -inf  ;;  %v663_v22 = vpop.f32.mrb[5].mxu0  ;;  %v475_v20 = vld [vmem:[%s3011_s22 + $0x58] sm:$0xff] }
 0x13a   : > { %764 = vmax.xlane.f32.xlu1 %v2885_v19  ;;  %1423 = vst [vmem:[%s2865_s13 + $0x28] sm:$0xff] %v2892_v21  ;;  %v2899_v23 = vsel %vm727_vm3, %v663_v22, -inf }
 0x13b   : > { %1422 = vst [vmem:[%s2865_s13 + $0x20] sm:$0xff] %v2899_v23  ;;  %768 = vmax.xlane.f32.xlu0 %v2899_v23 }
 0x13c   : > { %v2216_v24 = vpop.f32.mrb[6].mxu0 }
 0x13d   : > { %v2906_v25 = vsel %vm727_vm3, %v2216_v24, -inf  ;;  %v673_v26 = vpop.f32.mrb[7].mxu0  ;;  %v3054_v24 = vld [vmem:[#allocation3 + $0x30] sm:$0xff] }
 0x13e   : > { %770 = vmax.xlane.f32.xlu1 %v2892_v21  ;;  %1425 = vst [vmem:[%s2865_s13 + $0x38] sm:$0xff] %v2906_v25  ;;  %v2913_v27 = vsel %vm727_vm3, %v673_v26, -inf  ;;  %v2353_v26 = vpack.c.bf16 %v475_v20, %v474_v18  ;;  %v3113_v18 = vld [vmem:[#allocation3 + $0x70] sm:$0xff] }
 0x13f   : > { %1424 = vst [vmem:[%s2865_s13 + $0x30] sm:$0xff] %v2913_v27  ;;  %772 = vmax.xlane.f32.xlu0 %v2913_v27 }
 0x140   : > { %v2219_v28 = vpop.f32.mrb[8].mxu0  ;;  %2354 = vmatprep.subr.bf16.mxu1 %v2353_v26 }
 0x141   : > { %v2920_v29 = vsel %vm727_vm3, %v2219_v28, -inf  ;;  %v683_v30 = vpop.f32.mrb[9].mxu0  ;;  %2356 = vmatpush3.bf16.msra.mxu1 %v2353_v26 }
 0x142   : > { %774 = vmax.xlane.f32.xlu1 %v2906_v25  ;;  %1427 = vst [vmem:[%s2865_s13 + $0x48] sm:$0xff] %v2920_v29  ;;  %v2927_v31 = vsel %vm727_vm3, %v683_v30, -inf }
 0x143   : > { %1426 = vst [vmem:[%s2865_s13 + $0x40] sm:$0xff] %v2927_v31  ;;  %776 = vmax.xlane.f32.xlu0 %v2927_v31 }
 0x144   : > { %v2222_v32 = vpop.f32.mrb[10].mxu0 }
 0x145   : > { %v2934_v34 = vsel %vm727_vm3, %v2222_v32, -inf  ;;  %v693_v35 = vpop.f32.mrb[11].mxu0 }
 0x146   : > { %778 = vmax.xlane.f32.xlu1 %v2920_v29  ;;  %1429 = vst [vmem:[%s2865_s13 + $0x58] sm:$0xff] %v2934_v34  ;;  %v2941_v36 = vsel %vm727_vm3, %v693_v35, -inf }
 0x147   : > { %1428 = vst [vmem:[%s2865_s13 + $0x50] sm:$0xff] %v2941_v36  ;;  %780 = vmax.xlane.f32.xlu0 %v2941_v36 }
 0x148   : > { %v2225_v37 = vpop.f32.mrb[12].mxu0 }
 0x149   : > { %v2948_v38 = vsel %vm727_vm3, %v2225_v37, -inf  ;;  %v703_v39 = vpop.f32.mrb[13].mxu0  ;;  %v476_v37 = vld [vmem:[%s3011_s22 + $0x60] sm:$0xff] }
 0x14a   : > { %782 = vmax.xlane.f32.xlu1 %v2934_v34  ;;  %1431 = vst [vmem:[%s2865_s13 + $0x68] sm:$0xff] %v2948_v38  ;;  %v2955_v40 = vsel %vm727_vm3, %v703_v39, -inf  ;;  %v477_v39 = vld [vmem:[%s3011_s22 + $0x68] sm:$0xff] }
 0x14b   : > { %1430 = vst [vmem:[%s2865_s13 + $0x60] sm:$0xff] %v2955_v40  ;;  %784 = vmax.xlane.f32.xlu0 %v2955_v40  ;;  %v2357_v42 = vpack.c.bf16 %v477_v39, %v476_v37 }
 0x14c   : > { %v2228_v41 = vpop.f32.mrb[14].mxu0 }
 0x14d   : > { %v2994_v43 = vsel %vm727_vm3, %v2228_v41, -inf  ;;  %v713_v44 = vpop.f32.mrb[15].mxu0  ;;  %v3067_v41 = vld [vmem:[#allocation3 + $0x40] sm:$0xff]  ;;  %2358 = vmatprep.subr.bf16.mxu1 %v2357_v42 }
 0x14e   : > { %786 = vmax.xlane.f32.xlu1 %v2948_v38  ;;  %1433 = vst [vmem:[%s2865_s13 + $0x78] sm:$0xff] %v2994_v43  ;;  %v3001_v45 = vsel %vm727_vm3, %v713_v44, -inf  ;;  %2360 = vmatpush3.bf16.msra.mxu1 %v2357_v42 }
 0x14f   : > { %1432 = vst [vmem:[%s2865_s13 + $0x70] sm:$0xff] %v3001_v45  ;;  %788 = vmax.xlane.f32.xlu0 %v3001_v45  ;;  %2362 = vmatprep.subr.bf16.mxu1 %v2361_v55 }
 0x152   : > { %790 = vmax.xlane.f32.xlu1 %v2994_v43  ;;  %2364 = vmatpush3.bf16.msra.mxu1 %v2361_v55 }
 0x1c0   : > { %v761_v59 = vpop.xlane.xlu0 %760 }
 0x1c1   : > { %v792_v60 = vmax.f32 %v3021_v58, %v761_v59 }
 0x1c3   : > { %1402 = vst.msk [vmem:[#allocation3] sm:$0xff] %vm383_vm2, %v792_v60  ;;  %v767_v63 = vpop.xlane.xlu1 %766  ;;  %vm808_vm4 = vcmp.eq.f32.partialorder %v792_v60, -inf }
 0x1c4   : > { %v795_v0 = vmax.f32 %v3024_v61, %v767_v63  ;;  %v763_v1 = vpop.xlane.xlu0 %762  ;;  %v3030_v2 = vsel %vm808_vm4, 0.0, %v792_v60  ;;  %v3090_v63 = vld [vmem:[#allocation3 + $0x58] sm:$0xff] }
 0x1c5   : > { %v793_v3 = vmax.f32 %v3026_v62, %v763_v1  ;;  %890 = vperm.xlu0 %2425, %v3030_v2   ;;  %v840_v60 = vsub.f32 %v3021_v58, %v3030_v2  ;;  %v3096_v1 = vld [vmem:[#allocation3 + $0x60] sm:$0xff] }
 0x1c6   : > { %1405 = vst.msk [vmem:[#allocation3 + $0x18] sm:$0xff] %vm383_vm2, %v795_v0  ;;  %vm811_vm6 = vcmp.eq.f32.partialorder %v795_v0, -inf }
 0x1c7   : > { %1403 = vst.msk [vmem:[#allocation3 + $0x8] sm:$0xff] %vm383_vm2, %v793_v3  ;;  %v765_v9 = vpop.xlane.xlu1 %764  ;;  %vm809_vm5 = vcmp.eq.f32.partialorder %v793_v3, -inf  ;;  %v3052_v22 = vsel %vm811_vm6, 0.0, %v795_v0 }
 0x1c8   : > { %v794_v10 = vmax.f32 %v3034_v4, %v765_v9  ;;  %v3043_v11 = vsel %vm809_vm5, 0.0, %v793_v3  ;;  %v769_v12 = vpop.xlane.xlu0 %768  ;;  %v843_v3 = vsub.f32 %v3024_v61, %v3052_v22  ;;  %v856_v9 = vmul.f32 1.442695, %v840_v60 }
 0x1c9   : > { %895 = vperm.xlu1 %2426, %v3043_v11   ;;  %v796_v16 = vmax.f32 %v3039_v7, %v769_v12  ;;  %v841_v55 = vsub.f32 %v3026_v62, %v3043_v11 }
 0x1ca   : > { %1404 = vst.msk [vmem:[#allocation3 + $0x10] sm:$0xff] %vm383_vm2, %v794_v10  ;;  %vm810_vm7 = vcmp.eq.f32.partialorder %v794_v10, -inf  ;;  %v862_v20 = vmul.f32 1.442695, %v843_v3  ;;  %2427 = vpow2.f32 %v856_v9 }
 0x1cb   : > { %v771_v28 = vpop.xlane.xlu1 %770  ;;  %1406 = vst.msk [vmem:[#allocation3 + $0x20] sm:$0xff] %vm383_vm2, %v796_v16  ;;  %v3072_v47 = vsel %vm810_vm7, 0.0, %v794_v10  ;;  %vm812_vm9 = vcmp.eq.f32.partialorder %v796_v16, -inf  ;;  %v3109_v10 = vld [vmem:[#allocation3 + $0x68] sm:$0xff]  ;;  %v858_v62 = vmul.f32 1.442695, %v841_v55 }
 0x1cc   : > { %v797_v30 = vmax.f32 %v3046_v14, %v771_v28  ;;  %v773_v32 = vpop.xlane.xlu0 %772  ;;  %v3106_v2 = vsel %vm812_vm9, 0.0, %v796_v16  ;;  %2429 = vpow2.f32 %v862_v20  ;;  %v842_v11 = vsub.f32 %v3034_v4, %v3072_v47 }
 0x1cd   : > { %905 = vperm.xlu1 %2426, %v3052_v22   ;;  %v3062_v35 = vmax.f32 %v3054_v24, %v773_v32  ;;  %v3118_v32 = vld [vmem:[#allocation3 + $0x78] sm:$0xff] }
 0x1ce   : > { %1407 = vst.msk [vmem:[#allocation3 + $0x28] sm:$0xff] %vm383_vm2, %v797_v30  ;;  %vm813_vm8 = vcmp.eq.f32.partialorder %v797_v30, -inf }
 0x1cf   : > { %v775_v44 = vpop.xlane.xlu1 %774  ;;  %1408 = vst.msk [vmem:[#allocation3 + $0x30] sm:$0xff] %vm383_vm2, %v3062_v35  ;;  %v829_v53 = vsel %vm813_vm8, 0.0, %v797_v30  ;;  %vm814_vm13 = vcmp.eq.f32.partialorder %v3062_v35, -inf }
 0x1d0   : > { %v799_v46 = vmax.f32 %v3059_v33, %v775_v44  ;;  %v777_v48 = vpop.xlane.xlu0 %776  ;;  %v845_v30 = vsub.f32 %v3046_v14, %v829_v53 }
 0x1d1   : > { %900 = vperm.xlu1 %2426, %v3072_v47   ;;  %v3078_v50 = vmax.f32 %v3067_v41, %v777_v48 }
 0x1d2   : > { %1409 = vst.msk [vmem:[#allocation3 + $0x38] sm:$0xff] %vm383_vm2, %v799_v46  ;;  %vm815_vm11 = vcmp.eq.f32.partialorder %v799_v46, -inf  ;;  %v866_v51 = vmul.f32 1.442695, %v845_v30 }
 0x1d3   : > { %v779_v56 = vpop.xlane.xlu1 %778  ;;  %1410 = vst.msk [vmem:[#allocation3 + $0x40] sm:$0xff] %vm383_vm2, %v3078_v50  ;;  %v831_v12 = vsel %vm815_vm11, 0.0, %v799_v46  ;;  %v830_v46 = vsel %vm814_vm13, 0.0, %v3062_v35  ;;  %vm816_vm1 = vcmp.eq.f32.partialorder %v3078_v50, -inf }
 0x1d4   : > { %v801_v57 = vmax.f32 %v3075_v49, %v779_v56  ;;  %v781_v59 = vpop.xlane.xlu0 %780  ;;  %v847_v52 = vsub.f32 %v3059_v33, %v831_v12  ;;  %v832_v33 = vsel %vm816_vm1, 0.0, %v3078_v50  ;;  %2431 = vpow2.f32 %v866_v51  ;;  %v3151_v60 = vpop.eup %2427 }
 0x1d5   : > { %915 = vperm.xlu1 %2426, %v829_v53   ;;  %v3093_v0 = vmax.f32 %v3083_v54, %v781_v59 }
 0x1d6   : > { %1411 = vst.msk [vmem:[#allocation3 + $0x48] sm:$0xff] %vm383_vm2, %v801_v57  ;;  %vm817_vm10 = vcmp.eq.f32.partialorder %v801_v57, -inf  ;;  %v870_v59 = vmul.f32 1.442695, %v847_v52 }
 0x1d7   : > { %v783_v5 = vpop.xlane.xlu1 %782  ;;  %v3100_v6 = vsel %vm817_vm10, 0.0, %v801_v57  ;;  %1412 = vst.msk [vmem:[#allocation3 + $0x50] sm:$0xff] %vm383_vm2, %v3093_v0  ;;  %vm818_vm4 = vcmp.eq.f32.partialorder %v3093_v0, -inf }
 0x1d8   : > { %v803_v58 = vmax.f32 %v3090_v63, %v783_v5  ;;  %935 = vperm.xlu0 %2425, %v3100_v6   ;;  %v785_v8 = vpop.xlane.xlu0 %784  ;;  %v849_v57 = vsub.f32 %v3075_v49, %v3100_v6  ;;  %v834_v3 = vsel %vm818_vm4, 0.0, %v3093_v0  ;;  %v3155_v5 = vpop.eup %2429  ;;  %2433 = vpow2.f32 %v870_v59 }
 0x1d9   : > { %910 = vperm.xlu1 %2426, %v3106_v2   ;;  %v804_v61 = vmax.f32 %v3096_v1, %v785_v8  ;;  %2435 = vpow2.f32 %v858_v62  ;;  %v860_v49 = vmul.f32 1.442695, %v842_v11  ;;  %v844_v6 = vsub.f32 %v3039_v7, %v3106_v2 }
 0x1da   : > { %1413 = vst.msk [vmem:[#allocation3 + $0x58] sm:$0xff] %vm383_vm2, %v803_v58  ;;  %vm819_vm12 = vcmp.eq.f32.partialorder %v803_v58, -inf  ;;  %v874_v50 = vmul.f32 1.442695, %v849_v57  ;;  %v846_v8 = vsub.f32 %v3054_v24, %v830_v46  ;;  %v848_v7 = vsub.f32 %v3067_v41, %v832_v33 }
 0x1db   : > { %v787_v22 = vpop.xlane.xlu1 %786  ;;  %v835_v26 = vsel %vm819_vm12, 0.0, %v803_v58  ;;  %1414 = vst.msk [vmem:[#allocation3 + $0x60] sm:$0xff] %vm383_vm2, %v804_v61  ;;  %vm820_vm5 = vcmp.eq.f32.partialorder %v804_v61, -inf  ;;  %v864_v0 = vmul.f32 1.442695, %v844_v6 }
 0x1dc   : > { %v805_v16 = vmax.f32 %v3109_v10, %v787_v22  ;;  %945 = vperm.xlu0 %2425, %v835_v26   ;;  %v789_v28 = vpop.xlane.xlu0 %788  ;;  %v851_v58 = vsub.f32 %v3090_v63, %v835_v26  ;;  %v836_v4 = vsel %vm820_vm5, 0.0, %v804_v61  ;;  %2437 = vpow2.f32 %v874_v50 }
 0x1dd   : > { %925 = vperm.xlu1 %2426, %v831_v12   ;;  %v806_v37 = vmax.f32 %v3113_v18, %v789_v28  ;;  %2439 = vpow2.f32 %v860_v49  ;;  %v868_v63 = vmul.f32 1.442695, %v846_v8  ;;  %v872_v24 = vmul.f32 1.442695, %v848_v7 }
 0x1de   : > { %1415 = vst.msk [vmem:[#allocation3 + $0x68] sm:$0xff] %vm383_vm2, %v805_v16  ;;  %vm821_vm14 = vcmp.eq.f32.partialorder %v805_v16, -inf  ;;  %v878_v47 = vmul.f32 1.442695, %v851_v58  ;;  %v3162_v9 = vpop.eup %2431  ;;  %v850_v12 = vsub.f32 %v3083_v54, %v834_v3  ;;  %v852_v26 = vsub.f32 %v3096_v1, %v836_v4 }
 0x1df   : > { %v791_v39 = vpop.xlane.xlu1 %790  ;;  %v3123_v42 = vsel %vm821_vm14, 0.0, %v805_v16  ;;  %1416 = vst.msk [vmem:[#allocation3 + $0x70] sm:$0xff] %vm383_vm2, %v806_v37  ;;  %vm822_vm15 = vcmp.eq.f32.partialorder %v806_v37, -inf }
 0x1e0   : > { %v807_v44 = vmax.f32 %v3118_v32, %v791_v39  ;;  %v853_v14 = vsub.f32 %v3109_v10, %v3123_v42  ;;  %955 = vperm.xlu0 %2425, %v3123_v42   ;;  %v3131_v48 = vsel %vm822_vm15, 0.0, %v806_v37  ;;  %2441 = vpow2.f32 %v878_v47  ;;  %v1646_v42 = vld [vmem:[#allocation3 + $0x8] sm:$0xff] }
 0x1e1   : > { %920 = vperm.xlu1 %2426, %v830_v46   ;;  %v854_v53 = vsub.f32 %v3113_v18, %v3131_v48  ;;  %2443 = vpow2.f32 %v864_v0  ;;  %v876_v41 = vmul.f32 1.442695, %v850_v12  ;;  %v880_v54 = vmul.f32 1.442695, %v852_v26  ;;  %v1647_v18 = vld [vmem:[#allocation3 + $0x10] sm:$0xff] }
 0x1e2   : > { %1417 = vst.msk [vmem:[#allocation3 + $0x78] sm:$0xff] %vm383_vm2, %v807_v44  ;;  %vm823_vm3 = vcmp.eq.f32.partialorder %v807_v44, -inf  ;;  %v3167_v2 = vpop.eup %2433  ;;  %2445 = vpow2.f32 %v868_v63  ;;  %vm1663_vm7 = vcmp.eq.f32.partialorder %v1647_v18, -inf  ;;  %vm1662_vm10 = vcmp.eq.f32.partialorder %v1646_v42, -inf }
 0x1e3   : > { %v3140_v56 = vsel %vm823_vm3, 0.0, %v807_v44  ;;  %v3169_v61 = vpop.eup %2435  ;;  %2447 = vpow2.f32 %v872_v24  ;;  %v1679_v10 = vsel %vm1663_vm7, 0.0, %v1647_v18 }
 0x1e4   : > { %v855_v35 = vsub.f32 %v3118_v32, %v3140_v56  ;;  %965 = vperm.xlu0 %2425, %v3140_v56   ;;  %2449 = vpow2.f32 %v876_v41  ;;  %v1651_v32 = vld [vmem:[#allocation3 + $0x30] sm:$0xff] }
 0x1e5   : > { %930 = vperm.xlu1 %2426, %v832_v33   ;;  %2451 = vpow2.f32 %v880_v54  ;;  %vm1667_vm9 = vcmp.eq.f32.partialorder %v1651_v32, -inf }
 0x1e6   : > { %v3174_v20 = vpop.eup %2437 }
 0x1e7   : > { %v3176_v22 = vpop.eup %2439 }
 0x1e8   : > { %1131 = vperm.xlu0 %2425, %v3151_v60  }
 0x1e9   : > { %940 = vperm.xlu1 %2426, %v834_v3  }
 0x1ea   : > { %v3181_v16 = vpop.eup %2441 }
 0x1eb   : > { %v3183_v28 = vpop.eup %2443 }
 0x1ec   : > { %1146 = vperm.xlu0 %2425, %v3155_v5   ;;  %v3187_v30 = vpop.eup %2445 }
 0x1ed   : > { %950 = vperm.xlu1 %2426, %v836_v4   ;;  %v3190_v37 = vpop.eup %2447 }
 0x1ee   : > { %v3193_v1 = vpop.eup %2449 }
 0x1ef   : > { %v3196_v39 = vpop.eup %2451 }
 0x1f0   : > { %1156 = vperm.xlu0 %2425, %v3162_v9  }
 0x1f1   : > { %960 = vperm.xlu1 %2426, %v3131_v48  }
 0x1f4   : > { %1166 = vperm.xlu0 %2425, %v3167_v2  }
 0x1f5   : > { %1136 = vperm.xlu1 %2426, %v3169_v61  }
 0x1f8   : > { %1176 = vperm.xlu0 %2425, %v3174_v20  }
 0x1f9   : > { %1141 = vperm.xlu1 %2426, %v3176_v22  }
 0x1fc   : > { %1186 = vperm.xlu0 %2425, %v3181_v16  }
 0x1fd   : > { %1151 = vperm.xlu1 %2426, %v3183_v28  }
 0x201   : > { %1161 = vperm.xlu1 %2426, %v3187_v30  }
 0x205   : > { %1171 = vperm.xlu1 %2426, %v3190_v37  }
 0x209   : > { %1181 = vperm.xlu1 %2426, %v3193_v1  }
 0x20d   : > { %1191 = vperm.xlu1 %2426, %v3196_v39  }
 0x244   : > { %v891_v44 = vpop.permute.xlu0 %890 }
 0x245   : > { %v968_v46 = vsub.f32 %v2871_v15, %v891_v44 }
 0x247   : > { %v984_v51 = vmul.f32 1.442695, %v968_v46 }
 0x248   : > { %v896_v52 = vpop.permute.xlu1 %895 }
 0x249   : > { %2453 = vpow2.f32 %v984_v51  ;;  %v969_v55 = vsub.f32 %v2863_v13, %v896_v52 }
 0x24b   : > { %v986_v33 = vmul.f32 1.442695, %v969_v55 }
 0x24c   : > { %v906_v57 = vpop.permute.xlu1 %905 }
 0x24d   : > { %2455 = vpow2.f32 %v986_v33  ;;  %v971_v59 = vsub.f32 %v2878_v17, %v906_v57 }
 0x24f   : > { %v990_v62 = vmul.f32 1.442695, %v971_v59 }
 0x250   : > { %v901_v11 = vpop.permute.xlu1 %900 }
 0x251   : > { %2457 = vpow2.f32 %v990_v62  ;;  %v970_v3 = vsub.f32 %v2885_v19, %v901_v11 }
 0x253   : > { %v2454_v50 = vpop.eup %2453  ;;  %v988_v58 = vmul.f32 1.442695, %v970_v3 }
 0x254   : > { %v916_v49 = vpop.permute.xlu1 %915  ;;  %1048 = vadd.xlane.f32.xlu1 %v2454_v50  ;;  %2261 = vmatprep.mubr.f32.mxu1 %v2454_v50 }
 0x255   : > { %2459 = vpow2.f32 %v988_v58  ;;  %v973_v15 = vsub.f32 %v2892_v21, %v916_v49 }
 0x257   : > { %v2456_v6 = vpop.eup %2455  ;;  %v994_v13 = vmul.f32 1.442695, %v973_v15  ;;  %v936_v4 = vpop.permute.xlu0 %935 }
 0x258   : > { %v911_v47 = vpop.permute.xlu1 %910  ;;  %1050 = vadd.xlane.f32.xlu0 %v2456_v6  ;;  %2262 = vmatmul.mubr.f32.vlgmr.msra.gmra.mrb[0].mxu1 %v2456_v6  ;;  %v977_v24 = vsub.f32 %v2920_v29, %v936_v4 }
 0x259   : > { %2461 = vpow2.f32 %v994_v13  ;;  %v972_v17 = vsub.f32 %v2899_v23, %v911_v47 }
 0x25a   : > { %v1002_v23 = vmul.f32 1.442695, %v977_v24  ;;  %v1645_v24 = vld [vmem:[#allocation3] sm:$0xff] }
 0x25b   : > { %v2458_v0 = vpop.eup %2457  ;;  %v992_v8 = vmul.f32 1.442695, %v972_v17  ;;  %v946_v19 = vpop.permute.xlu0 %945  ;;  %vm1661_vm6 = vcmp.eq.f32.partialorder %v1645_v24, -inf }
 0x25c   : > { %v926_v63 = vpop.permute.xlu1 %925  ;;  %1054 = vadd.xlane.f32.xlu1 %v2458_v0  ;;  %v979_v44 = vsub.f32 %v2934_v34, %v946_v19  ;;  %v884_v19 = vmul.f32 1.442695, %v854_v53  ;;  %v1677_v48 = vsel %vm1661_vm6, 0.0, %v1645_v24  ;;  %v1649_v53 = vld [vmem:[#allocation3 + $0x20] sm:$0xff]  ;;  %v1017_v24 = vld [vmem:[#allocation4 + $0x8] sm:$0xff] }
 0x25d   : > { %2463 = vpow2.f32 %v992_v8  ;;  %v975_v7 = vsub.f32 %v2906_v25, %v926_v63  ;;  %v882_v63 = vmul.f32 1.442695, %v853_v14  ;;  %vm1665_vm8 = vcmp.eq.f32.partialorder %v1649_v53, -inf }
 0x25e   : > { %v1006_v29 = vmul.f32 1.442695, %v979_v44  ;;  %v1681_v56 = vsel %vm1665_vm8, 0.0, %v1649_v53  ;;  %v1650_v44 = vld [vmem:[#allocation3 + $0x28] sm:$0xff] }
 0x25f   : > { %v2460_v21 = vpop.eup %2459  ;;  %v998_v12 = vmul.f32 1.442695, %v975_v7  ;;  %v956_v26 = vpop.permute.xlu0 %955  ;;  %v886_v7 = vmul.f32 1.442695, %v855_v35  ;;  %v1653_v35 = vld [vmem:[#allocation3 + $0x40] sm:$0xff]  ;;  %vm1666_vm14 = vcmp.eq.f32.partialorder %v1650_v44, -inf }
 0x260   : > { %v921_v41 = vpop.permute.xlu1 %920  ;;  %1052 = vadd.xlane.f32.xlu0 %v2460_v21  ;;  %2264 = vmatprep.mubr.f32.mxu1 %v2460_v21  ;;  %v981_v55 = vsub.f32 %v2948_v38, %v956_v26  ;;  %v1683_v26 = vsel %vm1667_vm9, 0.0, %v1651_v32  ;;  %vm1669_vm11 = vcmp.eq.f32.partialorder %v1653_v35, -inf }
 0x261   : > { %2465 = vpow2.f32 %v998_v12  ;;  %v974_v54 = vsub.f32 %v2913_v27, %v921_v41  ;;  %2265 = vmatmul.mubr.f32.gmra.mrb[2].mxu1 %v2458_v0  ;;  %v1648_v41 = vld [vmem:[#allocation3 + $0x18] sm:$0xff] }
 0x262   : > { %v1010_v34 = vmul.f32 1.442695, %v981_v55  ;;  %vm1664_vm12 = vcmp.eq.f32.partialorder %v1648_v41, -inf  ;;  %v1682_v55 = vsel %vm1666_vm14, 0.0, %v1650_v44 }
 0x263   : > { %v2462_v46 = vpop.eup %2461  ;;  %v996_v51 = vmul.f32 1.442695, %v974_v54  ;;  %v966_v57 = vpop.permute.xlu0 %965  ;;  %v1678_v54 = vsel %vm1662_vm10, 0.0, %v1646_v42 }
 0x264   : > { %v931_v52 = vpop.permute.xlu1 %930  ;;  %1058 = vadd.xlane.f32.xlu1 %v2462_v46  ;;  %v983_v11 = vsub.f32 %v2994_v43, %v966_v57  ;;  %v1654_v57 = vld [vmem:[#allocation3 + $0x48] sm:$0xff] }
 0x265   : > { %2467 = vpow2.f32 %v996_v51  ;;  %v976_v25 = vsub.f32 %v2927_v31, %v931_v52  ;;  %v1680_v51 = vsel %vm1664_vm12, 0.0, %v1648_v41  ;;  %v1657_v52 = vld [vmem:[#allocation3 + $0x60] sm:$0xff]  ;;  %vm1670_vm4 = vcmp.eq.f32.partialorder %v1654_v57, -inf }
 0x266   : > { %2469 = vpow2.f32 %v1002_v23  ;;  %v1014_v58 = vmul.f32 1.442695, %v983_v11  ;;  %v1655_v23 = vld [vmem:[#allocation3 + $0x50] sm:$0xff]  ;;  %vm1673_vm15 = vcmp.eq.f32.partialorder %v1657_v52, -inf  ;;  %v1686_v11 = vsel %vm1670_vm4, 0.0, %v1654_v57 }
 0x267   : > { %v2464_v33 = vpop.eup %2463  ;;  %v1000_v59 = vmul.f32 1.442695, %v976_v25  ;;  %vm1671_vm13 = vcmp.eq.f32.partialorder %v1655_v23, -inf  ;;  %v1652_v25 = vld [vmem:[#allocation3 + $0x38] sm:$0xff] }
 0x268   : > { %v941_v62 = vpop.permute.xlu1 %940  ;;  %1056 = vadd.xlane.f32.xlu0 %v2464_v33  ;;  %2267 = vmatprep.mubr.f32.mxu1 %v2464_v33  ;;  %vm1668_vm1 = vcmp.eq.f32.partialorder %v1652_v25, -inf  ;;  %v1659_v33 = vld [vmem:[#allocation3 + $0x70] sm:$0xff] }
 0x269   : > { %2471 = vpow2.f32 %v1000_v59  ;;  %v978_v27 = vsub.f32 %v2941_v36, %v941_v62  ;;  %2268 = vmatmul.mubr.f32.gmra.mrb[4].mxu1 %v2462_v46  ;;  %v1685_v46 = vsel %vm1669_vm11, 0.0, %v1653_v35  ;;  %v1689_v59 = vsel %vm1673_vm15, 0.0, %v1657_v52  ;;  %v1018_v35 = vld [vmem:[#allocation4 + $0x10] sm:$0xff] }
 0x26a   : > { %2473 = vpow2.f32 %v1006_v29  ;;  %v1687_v29 = vsel %vm1671_vm13, 0.0, %v1655_v23  ;;  %v1684_v62 = vsel %vm1668_vm1, 0.0, %v1652_v25  ;;  %vm1675_vm3 = vcmp.eq.f32.partialorder %v1659_v33, -inf  ;;  %v1021_v23 = vld [vmem:[#allocation4 + $0x28] sm:$0xff] }
 0x26b   : > { %v2466_v3 = vpop.eup %2465  ;;  %v1004_v31 = vmul.f32 1.442695, %v978_v27  ;;  %v1656_v27 = vld [vmem:[#allocation3 + $0x58] sm:$0xff] }
 0x26c   : > { %v951_v50 = vpop.permute.xlu1 %950  ;;  %1062 = vadd.xlane.f32.xlu1 %v2466_v3  ;;  %vm1672_vm5 = vcmp.eq.f32.partialorder %v1656_v27, -inf }
 0x26d   : > { %2475 = vpow2.f32 %v1004_v31  ;;  %v980_v38 = vsub.f32 %v2955_v40, %v951_v50  ;;  %v1688_v31 = vsel %vm1672_vm5, 0.0, %v1656_v27  ;;  %v1660_v50 = vld [vmem:[#allocation3 + $0x78] sm:$0xff] }
 0x26e   : > { %2477 = vpow2.f32 %v1010_v34  ;;  %v1691_v34 = vsel %vm1675_vm3, 0.0, %v1659_v33  ;;  %vm1676_vm7 = vcmp.eq.f32.partialorder %v1660_v50, -inf }
 0x26f   : > { %v2468_v49 = vpop.eup %2467  ;;  %v1008_v15 = vmul.f32 1.442695, %v980_v38 }
 0x270   : > { %v2470_v6 = vpop.eup %2469  ;;  %1060 = vadd.xlane.f32.xlu0 %v2468_v49  ;;  %v961_v13 = vpop.permute.xlu1 %960  ;;  %2270 = vmatprep.mubr.f32.mxu1 %v2468_v49  ;;  %v1692_v49 = vsel %vm1676_vm7, 0.0, %v1660_v50  ;;  %v1025_v50 = vld [vmem:[#allocation4 + $0x48] sm:$0xff] }
 0x271   : > { %2479 = vpow2.f32 %v1008_v15  ;;  %v982_v36 = vsub.f32 %v3001_v45, %v961_v13  ;;  %1066 = vadd.xlane.f32.xlu1 %v2470_v6  ;;  %2271 = vmatmul.mubr.f32.gmra.mrb[6].mxu1 %v2466_v3  ;;  %v1658_v3 = vld [vmem:[#allocation3 + $0x68] sm:$0xff] }
 0x272   : > { %2481 = vpow2.f32 %v1014_v58  ;;  %vm1674_vm6 = vcmp.eq.f32.partialorder %v1658_v3, -inf }
 0x273   : > { %v2472_v43 = vpop.eup %2471  ;;  %v1012_v4 = vmul.f32 1.442695, %v982_v36  ;;  %v1690_v38 = vsel %vm1674_vm6, 0.0, %v1658_v3 }
 0x274   : > { %v2474_v47 = vpop.eup %2473  ;;  %1064 = vadd.xlane.f32.xlu0 %v2472_v43  ;;  %2273 = vmatprep.mubr.f32.mxu1 %v2472_v43  ;;  %v3233_v58 = vpop.permute.xlu1 %1136 }
 0x275   : > { %2483 = vpow2.f32 %v1012_v4  ;;  %1070 = vadd.xlane.f32.xlu1 %v2474_v47  ;;  %2274 = vmatmul.mubr.f32.gmra.mrb[8].mxu1 %v2470_v6  ;;  %v3237_v6 = vpop.permute.xlu0 %1131 }
 0x276   : > { %2485 = vpow2.f32 %v884_v19 }
 0x277   : > { %v2476_v40 = vpop.eup %2475  ;;  %2487 = vpow2.f32 %v882_v63 }
 0x278   : > { %v2478_v17 = vpop.eup %2477  ;;  %1068 = vadd.xlane.f32.xlu0 %v2476_v40  ;;  %2276 = vmatprep.mubr.f32.mxu1 %v2476_v40  ;;  %2489 = vpow2.f32 %v886_v7  ;;  %v3235_v15 = vpop.permute.xlu1 %1141 }
 0x279   : > { %1074 = vadd.xlane.f32.xlu1 %v2478_v17  ;;  %2277 = vmatmul.mubr.f32.gmra.mrb[10].mxu1 %v2474_v47  ;;  %v3241_v36 = vpop.permute.xlu0 %1146 }
 0x27b   : > { %v2480_v0 = vpop.eup %2479 }
 0x27c   : > { %v2482_v8 = vpop.eup %2481  ;;  %1072 = vadd.xlane.f32.xlu0 %v2480_v0  ;;  %2279 = vmatprep.mubr.f32.mxu1 %v2480_v0  ;;  %v3239_v13 = vpop.permute.xlu1 %1151 }
 0x27d   : > { %1078 = vadd.xlane.f32.xlu1 %v2482_v8  ;;  %2280 = vmatmul.mubr.f32.gmra.mrb[12].mxu1 %v2478_v17  ;;  %v3245_v4 = vpop.permute.xlu0 %1156 }
 0x27f   : > { %v2484_v45 = vpop.eup %2483 }
 0x280   : > { %1076 = vadd.xlane.f32.xlu0 %v2484_v45  ;;  %2282 = vmatprep.mubr.f32.mxu1 %v2484_v45  ;;  %v3224_v21 = vpop.eup %2485  ;;  %v3243_v43 = vpop.permute.xlu1 %1161  ;;  %v1016_v45 = vld [vmem:[#allocation4] sm:$0xff] }
 0x281   : > { %2283 = vmatmul.mubr.f32.gmra.mrb[14].mxu1 %v2482_v8  ;;  %v3227_v12 = vpop.eup %2487  ;;  %v3249_v40 = vpop.permute.xlu0 %1166  ;;  %v1032_v19 = vmul.f32 %v3151_v60, %v1016_v45 }
 0x282   : > { %v3230_v14 = vpop.eup %2489 }
 0x284   : > { %v3247_v47 = vpop.permute.xlu1 %1171 }
 0x285   : > { %v3253_v0 = vpop.permute.xlu0 %1176 }
 0x288   : > { %v3251_v17 = vpop.permute.xlu1 %1181 }
 0x289   : > { %v3258_v63 = vpop.permute.xlu0 %1186 }
 0x28c   : > { %v3255_v8 = vpop.permute.xlu1 %1191 }
 0x28e   : > { %1201 = vperm.xlu1 %2426, %v3224_v21  }
 0x292   : > { %1711 = vperm.xlu1 %2426, %v1677_v48   ;;  %v1033_v48 = vmul.f32 %v3169_v61, %v1017_v24  ;;  %v1024_v24 = vld [vmem:[#allocation4 + $0x40] sm:$0xff] }
 0x296   : > { %1721 = vperm.xlu1 %2426, %v1679_v10   ;;  %1196 = vperm.xlu0 %2425, %v3227_v12   ;;  %v1019_v10 = vld [vmem:[#allocation4 + $0x18] sm:$0xff] }
 0x297   : > { %v1035_v42 = vmul.f32 %v3155_v5, %v1019_v10  ;;  %v1020_v5 = vld [vmem:[#allocation4 + $0x20] sm:$0xff]  ;;  %v1027_v10 = vld [vmem:[#allocation4 + $0x58] sm:$0xff] }
 0x29a   : > { %1731 = vperm.xlu1 %2426, %v1681_v56   ;;  %1206 = vperm.xlu0 %2425, %v3230_v14  }
 0x29e   : > { %1741 = vperm.xlu1 %2426, %v1683_v26   ;;  %1716 = vperm.xlu0 %2425, %v1678_v54   ;;  %v1034_v26 = vmul.f32 %v3176_v22, %v1018_v35 }
 0x2a2   : > { %1751 = vperm.xlu1 %2426, %v1685_v46   ;;  %1726 = vperm.xlu0 %2425, %v1680_v51   ;;  %v1037_v46 = vmul.f32 %v3162_v9, %v1021_v23 }
 0x2a6   : > { %1761 = vperm.xlu1 %2426, %v1687_v29   ;;  %1736 = vperm.xlu0 %2425, %v1682_v55   ;;  %v1036_v29 = vmul.f32 %v3183_v28, %v1020_v5  ;;  %v1023_v55 = vld [vmem:[#allocation4 + $0x38] sm:$0xff] }
 0x2a7   : > { %v1039_v9 = vmul.f32 %v3167_v2, %v1023_v55 }
 0x2aa   : > { %1771 = vperm.xlu1 %2426, %v1689_v59   ;;  %1746 = vperm.xlu0 %2425, %v1684_v62  }
 0x2ae   : > { %1781 = vperm.xlu1 %2426, %v1691_v34   ;;  %1756 = vperm.xlu0 %2425, %v1686_v11   ;;  %v1022_v11 = vld [vmem:[#allocation4 + $0x30] sm:$0xff] }
 0x2af   : > { %v1038_v45 = vmul.f32 %v3187_v30, %v1022_v11 }
 0x2b2   : > { %1766 = vperm.xlu0 %2425, %v1688_v31  }
 0x2b6   : > { %1776 = vperm.xlu0 %2425, %v1690_v38  }
 0x2ba   : > { %1786 = vperm.xlu0 %2425, %v1692_v49  }
 0x2e1   : > { %v1049_v7 = vpop.xlane.xlu1 %1048 }
 0x2e2   : > { %v1080_v18 = vadd.f32 %v1049_v7, %v1032_v19  ;;  %v1041_v19 = vmul.f32 %v3174_v20, %v1025_v50  ;;  %v1043_v20 = vmul.f32 %v3181_v16, %v1027_v10  ;;  %v1030_v50 = vld [vmem:[#allocation4 + $0x70] sm:$0xff] }
 0x2e4   : > { %1097 = vst.msk [vmem:[#allocation4] sm:$0xff] %vm383_vm2, %v1080_v18 }
 0x2e5   : > { %v1051_v53 = vpop.xlane.xlu0 %1050 }
 0x2e6   : > { %v1081_v32 = vadd.f32 %v1051_v53, %v1033_v48 }
 0x2e8   : > { %1098 = vst.msk [vmem:[#allocation4 + $0x8] sm:$0xff] %vm383_vm2, %v1081_v32 }
 0x2e9   : > { %v1055_v56 = vpop.xlane.xlu1 %1054 }
 0x2ea   : > { %v1083_v41 = vadd.f32 %v1055_v56, %v1035_v42 }
 0x2eb   : > { %v1437_v60 = vld [vmem:[#allocation4] sm:$0xff] }
 0x2ec   : > { %1100 = vst.msk [vmem:[#allocation4 + $0x18] sm:$0xff] %vm383_vm2, %v1083_v41  ;;  %2491 = vrcp.f32 %v1437_v60  ;;  %v1040_v41 = vmul.f32 %v3190_v37, %v1024_v24 }
 0x2ed   : > { %v1053_v54 = vpop.xlane.xlu0 %1052 }
 0x2ee   : > { %v1082_v44 = vadd.f32 %v1053_v54, %v1034_v26  ;;  %v1026_v26 = vld [vmem:[#allocation4 + $0x50] sm:$0xff] }
 0x2ef   : > { %v1438_v61 = vld [vmem:[#allocation4 + $0x8] sm:$0xff]  ;;  %v1042_v37 = vmul.f32 %v3193_v1, %v1026_v26 }
 0x2f0   : > { %1099 = vst.msk [vmem:[#allocation4 + $0x10] sm:$0xff] %vm383_vm2, %v1082_v44  ;;  %2493 = vrcp.f32 %v1438_v61 }
 0x2f1   : > { %v1059_v51 = vpop.xlane.xlu1 %1058 }
 0x2f2   : > { %v1085_v52 = vadd.f32 %v1059_v51, %v1037_v46 }
 0x2f3   : > { %v1440_v25 = vld [vmem:[#allocation4 + $0x18] sm:$0xff] }
 0x2f4   : > { %1102 = vst.msk [vmem:[#allocation4 + $0x28] sm:$0xff] %vm383_vm2, %v1085_v52  ;;  %2495 = vrcp.f32 %v1440_v25 }
 0x2f5   : > { %v1057_v22 = vpop.xlane.xlu0 %1056 }
 0x2f6   : > { %v2492_v33 = vpop.eup %2491  ;;  %v1084_v57 = vadd.f32 %v1057_v22, %v1036_v29  ;;  %v1028_v22 = vld [vmem:[#allocation4 + $0x60] sm:$0xff] }
 0x2f7   : > { %v1469_v59 = vmul.f32 %v2492_v33, %v1437_v60  ;;  %v1439_v62 = vld [vmem:[#allocation4 + $0x10] sm:$0xff]  ;;  %v1044_v1 = vmul.f32 %v3196_v39, %v1028_v22  ;;  %v1046_v39 = vmul.f32 %v3224_v21, %v1030_v50 }
 0x2f8   : > { %1101 = vst.msk [vmem:[#allocation4 + $0x20] sm:$0xff] %vm383_vm2, %v1084_v57  ;;  %2497 = vrcp.f32 %v1439_v62 }
 0x2f9   : > { %v1063_v27 = vpop.xlane.xlu1 %1062  ;;  %v1485_v34 = vsub.f32 2.0, %v1469_v59  ;;  %v1031_v59 = vld [vmem:[#allocation4 + $0x78] sm:$0xff] }
 0x2fa   : > { %v2494_v3 = vpop.eup %2493  ;;  %v1087_v31 = vadd.f32 %v1063_v27, %v1039_v9 }
 0x2fb   : > { %v1501_v38 = vmul.f32 %v2492_v33, %v1485_v34  ;;  %v1470_v28 = vmul.f32 %v2494_v3, %v1438_v61  ;;  %v1442_v49 = vld [vmem:[#allocation4 + $0x28] sm:$0xff] }
 0x2fc   : > { %1104 = vst.msk [vmem:[#allocation4 + $0x38] sm:$0xff] %vm383_vm2, %v1087_v31  ;;  %2499 = vrcp.f32 %v1442_v49  ;;  %v1029_v61 = vld [vmem:[#allocation4 + $0x68] sm:$0xff] }
 0x2fd   : > { %1535 = vperm.xlu1 %2426, %v1501_v38   ;;  %v1061_v7 = vpop.xlane.xlu0 %1060  ;;  %v1486_v2 = vsub.f32 2.0, %v1470_v28  ;;  %v1045_v16 = vmul.f32 %v3227_v12, %v1029_v61  ;;  %v1047_v12 = vmul.f32 %v3230_v14, %v1031_v59 }
 0x2fe   : > { %v2496_v18 = vpop.eup %2495  ;;  %v1067_v48 = vpop.xlane.xlu1 %1066  ;;  %v1086_v53 = vadd.f32 %v1061_v7, %v1038_v45 }
 0x2ff   : > { %v1089_v32 = vadd.f32 %v1067_v48, %v1041_v19  ;;  %v1502_v42 = vmul.f32 %v2494_v3, %v1486_v2  ;;  %v1472_v56 = vmul.f32 %v2496_v18, %v1440_v25  ;;  %v1441_v35 = vld [vmem:[#allocation4 + $0x20] sm:$0xff] }
 0x300   : > { %1103 = vst.msk [vmem:[#allocation4 + $0x30] sm:$0xff] %vm383_vm2, %v1086_v53  ;;  %2501 = vrcp.f32 %v1441_v35 }
 0x301   : > { %1106 = vst.msk [vmem:[#allocation4 + $0x48] sm:$0xff] %vm383_vm2, %v1089_v32  ;;  %1540 = vperm.xlu0 %2425, %v1502_v42   ;;  %v1065_v30 = vpop.xlane.xlu0 %1064  ;;  %v1488_v60 = vsub.f32 2.0, %v1472_v56 }
 0x302   : > { %v2498_v54 = vpop.eup %2497  ;;  %v1071_v23 = vpop.xlane.xlu1 %1070  ;;  %v1088_v44 = vadd.f32 %v1065_v30, %v1040_v41 }
 0x303   : > { %v1091_v46 = vadd.f32 %v1071_v23, %v1043_v20  ;;  %v1504_v51 = vmul.f32 %v2496_v18, %v1488_v60  ;;  %v1471_v5 = vmul.f32 %v2498_v54, %v1439_v62  ;;  %v1444_v52 = vld [vmem:[#allocation4 + $0x38] sm:$0xff] }
 0x304   : > { %1105 = vst.msk [vmem:[#allocation4 + $0x40] sm:$0xff] %vm383_vm2, %v1088_v44  ;;  %2503 = vrcp.f32 %v1444_v52 }
 0x305   : > { %1108 = vst.msk [vmem:[#allocation4 + $0x58] sm:$0xff] %vm383_vm2, %v1091_v46  ;;  %1550 = vperm.xlu0 %2425, %v1504_v51   ;;  %v1069_v25 = vpop.xlane.xlu0 %1068  ;;  %v1487_v29 = vsub.f32 2.0, %v1471_v5 }
 0x306   : > { %v2500_v55 = vpop.eup %2499  ;;  %v1075_v33 = vpop.xlane.xlu1 %1074  ;;  %v1090_v57 = vadd.f32 %v1069_v25, %v1042_v37 }
 0x307   : > { %v1093_v9 = vadd.f32 %v1075_v33, %v1045_v16  ;;  %v1503_v62 = vmul.f32 %v2498_v54, %v1487_v29  ;;  %v1474_v27 = vmul.f32 %v2500_v55, %v1442_v49  ;;  %v1443_v34 = vld [vmem:[#allocation4 + $0x30] sm:$0xff] }
 0x308   : > { %1107 = vst.msk [vmem:[#allocation4 + $0x50] sm:$0xff] %vm383_vm2, %v1090_v57  ;;  %v1446_v11 = vld [vmem:[#allocation4 + $0x48] sm:$0xff]  ;;  %2505 = vrcp.f32 %v1443_v34 }
 0x309   : > { %1110 = vst.msk [vmem:[#allocation4 + $0x68] sm:$0xff] %vm383_vm2, %v1093_v9  ;;  %1545 = vperm.xlu1 %2426, %v1503_v62   ;;  %v1073_v3 = vpop.xlane.xlu0 %1072  ;;  %v1490_v31 = vsub.f32 2.0, %v1474_v27  ;;  %2507 = vrcp.f32 %v1446_v11 }
 0x30a   : > { %v2502_v38 = vpop.eup %2501  ;;  %v1079_v28 = vpop.xlane.xlu1 %1078  ;;  %v1092_v45 = vadd.f32 %v1073_v3, %v1044_v1 }
 0x30b   : > { %v1095_v49 = vadd.f32 %v1079_v28, %v1047_v12  ;;  %v1506_v19 = vmul.f32 %v2500_v55, %v1490_v31  ;;  %v1473_v7 = vmul.f32 %v2502_v38, %v1441_v35  ;;  %v1445_v2 = vld [vmem:[#allocation4 + $0x40] sm:$0xff] }
 0x30c   : > { %1109 = vst.msk [vmem:[#allocation4 + $0x60] sm:$0xff] %vm383_vm2, %v1092_v45  ;;  %v1448_v24 = vld [vmem:[#allocation4 + $0x58] sm:$0xff]  ;;  %2509 = vrcp.f32 %v1445_v2 }
 0x30d   : > { %1112 = vst.msk [vmem:[#allocation4 + $0x78] sm:$0xff] %vm383_vm2, %v1095_v49  ;;  %1560 = vperm.xlu0 %2425, %v1506_v19   ;;  %v1077_v14 = vpop.xlane.xlu0 %1076  ;;  %v1489_v18 = vsub.f32 2.0, %v1473_v7  ;;  %2511 = vrcp.f32 %v1448_v24 }
 0x30e   : > { %v2504_v48 = vpop.eup %2503  ;;  %v1094_v53 = vadd.f32 %v1077_v14, %v1046_v39 }
 0x30f   : > { %v1505_v10 = vmul.f32 %v2502_v38, %v1489_v18  ;;  %v1476_v32 = vmul.f32 %v2504_v48, %v1444_v52  ;;  %v1447_v42 = vld [vmem:[#allocation4 + $0x50] sm:$0xff] }
 0x310   : > { %1111 = vst.msk [vmem:[#allocation4 + $0x70] sm:$0xff] %vm383_vm2, %v1094_v53  ;;  %v1450_v56 = vld [vmem:[#allocation4 + $0x68] sm:$0xff]  ;;  %2513 = vrcp.f32 %v1447_v42 }
 0x311   : > { %1555 = vperm.xlu1 %2426, %v1505_v10   ;;  %v1492_v35 = vsub.f32 2.0, %v1476_v32  ;;  %2515 = vrcp.f32 %v1450_v56 }
 0x312   : > { %v2506_v21 = vpop.eup %2505 }
 0x313   : > { %v2508_v41 = vpop.eup %2507  ;;  %v1508_v20 = vmul.f32 %v2504_v48, %v1492_v35  ;;  %v1475_v30 = vmul.f32 %v2506_v21, %v1443_v34  ;;  %v1449_v60 = vld [vmem:[#allocation4 + $0x60] sm:$0xff] }
 0x314   : > { %v1478_v26 = vmul.f32 %v2508_v41, %v1446_v11  ;;  %v1452_v54 = vld [vmem:[#allocation4 + $0x78] sm:$0xff]  ;;  %2517 = vrcp.f32 %v1449_v60 }
 0x315   : > { %1570 = vperm.xlu0 %2425, %v1508_v20   ;;  %v1491_v23 = vsub.f32 2.0, %v1475_v30  ;;  %2519 = vrcp.f32 %v1452_v54 }
 0x316   : > { %v2510_v44 = vpop.eup %2509  ;;  %v1494_v61 = vsub.f32 2.0, %v1478_v26 }
 0x317   : > { %v2512_v46 = vpop.eup %2511  ;;  %v1507_v51 = vmul.f32 %v2506_v21, %v1491_v23  ;;  %v1477_v5 = vmul.f32 %v2510_v44, %v1445_v2  ;;  %v1451_v52 = vld [vmem:[#allocation4 + $0x70] sm:$0xff]  ;;  %v1114_v2 = vld [vmem:[#allocation5 + $0x8] sm:$0xff] }
 0x318   : > { %v1510_v37 = vmul.f32 %v2508_v41, %v1494_v61  ;;  %v1480_v16 = vmul.f32 %v2512_v46, %v1448_v24  ;;  %2521 = vrcp.f32 %v1451_v52  ;;  %v1113_v24 = vld [vmem:[#allocation5] sm:$0xff]  ;;  %v1210_v14 = vmul.f32 %v3233_v58, %v1114_v2 }
 0x319   : > { %1565 = vperm.xlu1 %2426, %v1507_v51   ;;  %v1493_v25 = vsub.f32 2.0, %v1477_v5  ;;  %v1209_v18 = vmul.f32 %v3237_v6, %v1113_v24  ;;  %v1118_v6 = vld [vmem:[#allocation5 + $0x28] sm:$0xff] }
 0x31a   : > { %v2514_v29 = vpop.eup %2513  ;;  %1580 = vperm.xlu0 %2425, %v1510_v37   ;;  %v1496_v22 = vsub.f32 2.0, %v1480_v16  ;;  %v1214_v26 = vmul.f32 %v3245_v4, %v1118_v6  ;;  %v1122_v5 = vld [vmem:[#allocation5 + $0x48] sm:$0xff]  ;;  %v1121_v16 = vld [vmem:[#allocation5 + $0x40] sm:$0xff] }
 0x31b   : > { %v2516_v55 = vpop.eup %2515  ;;  %v1509_v33 = vmul.f32 %v2510_v44, %v1493_v25  ;;  %v1479_v57 = vmul.f32 %v2514_v29, %v1447_v42  ;;  %v1116_v42 = vld [vmem:[#allocation5 + $0x18] sm:$0xff]  ;;  %v1694_v6 = vld [vmem:[%s2865_s13 + $0x8] sm:$0xff] }
 0x31c   : > { %v1512_v59 = vmul.f32 %v2512_v46, %v1496_v22  ;;  %v1482_v9 = vmul.f32 %v2516_v55, %v1450_v56  ;;  %v1115_v56 = vld [vmem:[#allocation5 + $0x10] sm:$0xff]  ;;  %v1212_v35 = vmul.f32 %v3241_v36, %v1116_v42  ;;  %v1218_v22 = vmul.f32 %v3253_v0, %v1122_v5  ;;  %v1126_v0 = vld [vmem:[#allocation5 + $0x68] sm:$0xff] }
 0x31d   : > { %1575 = vperm.xlu1 %2426, %v1509_v33   ;;  %v1495_v62 = vsub.f32 2.0, %v1479_v57  ;;  %v1211_v21 = vmul.f32 %v3235_v15, %v1115_v56  ;;  %v1120_v15 = vld [vmem:[#allocation5 + $0x38] sm:$0xff]  ;;  %v1119_v46 = vld [vmem:[#allocation5 + $0x30] sm:$0xff]  ;;  %v1217_v33 = vmul.f32 %v3247_v47, %v1121_v16  ;;  %v1202_v57 = vpop.permute.xlu1 %1201  ;;  %v1125_v47 = vld [vmem:[#allocation5 + $0x60] sm:$0xff] }
 0x31e   : > { %v2518_v27 = vpop.eup %2517  ;;  %1590 = vperm.xlu0 %2425, %v1512_v59   ;;  %v1498_v34 = vsub.f32 2.0, %v1482_v9  ;;  %v1216_v51 = vmul.f32 %v3249_v40, %v1120_v15  ;;  %v1123_v59 = vld [vmem:[#allocation5 + $0x50] sm:$0xff] }
 0x31f   : > { %v2520_v1 = vpop.eup %2519  ;;  %v1511_v11 = vmul.f32 %v2514_v29, %v1495_v62  ;;  %v1481_v12 = vmul.f32 %v2518_v27, %v1449_v60  ;;  %v1117_v60 = vld [vmem:[#allocation5 + $0x20] sm:$0xff]  ;;  %v1695_v15 = vld [vmem:[%s2865_s13 + $0x10] sm:$0xff] }
 0x320   : > { %v1514_v3 = vmul.f32 %v2516_v55, %v1498_v34  ;;  %v1484_v31 = vmul.f32 %v2520_v1, %v1452_v54  ;;  %v1213_v54 = vmul.f32 %v3239_v13, %v1117_v60  ;;  %v1197_v13 = vpop.permute.xlu0 %1196  ;;  %v1124_v55 = vld [vmem:[#allocation5 + $0x58] sm:$0xff]  ;;  %v1219_v34 = vmul.f32 %v3251_v17, %v1123_v59  ;;  %v1127_v17 = vld [vmem:[#allocation5 + $0x70] sm:$0xff] }
 0x321   : > { %1585 = vperm.xlu1 %2426, %v1511_v11   ;;  %v1497_v50 = vsub.f32 2.0, %v1481_v12  ;;  %v1223_v24 = vmul.f32 %v1202_v57, %v1127_v17 }
 0x322   : > { %v2522_v38 = vpop.eup %2521  ;;  %1600 = vperm.xlu0 %2425, %v1514_v3   ;;  %v1500_v28 = vsub.f32 2.0, %v1484_v31  ;;  %v1712_v31 = vpop.permute.xlu1 %1711 }
 0x323   : > { %v1513_v45 = vmul.f32 %v2518_v27, %v1497_v50  ;;  %v1483_v49 = vmul.f32 %v2522_v38, %v1451_v52  ;;  %v1215_v52 = vmul.f32 %v3243_v43, %v1119_v46  ;;  %v1220_v27 = vmul.f32 %v3258_v63, %v1124_v55  ;;  %v1128_v63 = vld [vmem:[#allocation5 + $0x78] sm:$0xff]  ;;  %v1697_v55 = vld [vmem:[%s2865_s13 + $0x20] sm:$0xff] }
 0x324   : > { %v1516_v19 = vmul.f32 %v2520_v1, %v1500_v28  ;;  %v1207_v1 = vpop.permute.xlu0 %1206  ;;  %v1221_v28 = vmul.f32 %v3255_v8, %v1125_v47 }
 0x325   : > { %1595 = vperm.xlu1 %2426, %v1513_v45   ;;  %v1499_v7 = vsub.f32 2.0, %v1483_v49 }
 0x326   : > { %1610 = vperm.xlu0 %2425, %v1516_v19  }
 0x327   : > { %v1515_v39 = vmul.f32 %v2522_v38, %v1499_v7  ;;  %v1222_v38 = vmul.f32 %v1197_v13, %v1126_v0 }
 0x328   : > { %v1717_v7 = vpop.permute.xlu0 %1716 }
 0x329   : > { %1605 = vperm.xlu1 %2426, %v1515_v39   ;;  %v1224_v39 = vmul.f32 %v1207_v1, %v1128_v63 }
 0x32b   : > { %v2263_v48 = vpop.f32.mrb[0].mxu1 }
 0x32c   : > { %v1371_v53 = vadd.f32 %v2263_v48, %v1210_v14  ;;  %v1291_v10 = vpop.f32.mrb[1].mxu1  ;;  %v1722_v14 = vpop.permute.xlu1 %1721 }
 0x32d   : > { %v1370_v32 = vadd.f32 %v1291_v10, %v1209_v18  ;;  %v1727_v10 = vpop.permute.xlu0 %1726  ;;  %v1791_v46 = vsub.f32 %v1695_v15, %v1722_v14 }
 0x32e   : > { %1387 = vst.msk [vmem:[#allocation5 + $0x8] sm:$0xff] %vm366_vm0, %v1371_v53 }
 0x32f   : > { %1386 = vst.msk [vmem:[#allocation5] sm:$0xff] %vm366_vm0, %v1370_v32  ;;  %v1809_v16 = vmul.f32 1.442695, %v1791_v46 }
 0x330   : > { %v1732_v32 = vpop.permute.xlu1 %1731 }
 0x331   : > { %v1737_v42 = vpop.permute.xlu0 %1736 }
 0x334   : > { %v2266_v41 = vpop.f32.mrb[2].mxu1  ;;  %v3320_v56 = vpop.permute.xlu1 %1741 }
 0x335   : > { %v1373_v20 = vadd.f32 %v2266_v41, %v1212_v35  ;;  %v1301_v30 = vpop.f32.mrb[3].mxu1  ;;  %v1747_v35 = vpop.permute.xlu0 %1746  ;;  %v1693_v41 = vld [vmem:[%s2865_s13] sm:$0xff] }
 0x336   : > { %v1372_v58 = vadd.f32 %v1301_v30, %v1211_v21 }
 0x337   : > { %1389 = vst.msk [vmem:[#allocation5 + $0x18] sm:$0xff] %vm366_vm0, %v1373_v20  ;;  %v1789_v20 = vsub.f32 %v1693_v41, %v1712_v31  ;;  %v1699_v31 = vld [vmem:[%s2865_s13 + $0x30] sm:$0xff] }
 0x338   : > { %1388 = vst.msk [vmem:[#allocation5 + $0x10] sm:$0xff] %vm366_vm0, %v1372_v58  ;;  %v3322_v21 = vpop.permute.xlu1 %1751 }
 0x339   : > { %v3325_v30 = vpop.permute.xlu0 %1756  ;;  %v1805_v60 = vmul.f32 1.442695, %v1789_v20 }
 0x33b   : > { %2523 = vpow2.f32 %v1805_v60 }
 0x33c   : > { %v2269_v23 = vpop.f32.mrb[4].mxu1  ;;  %v3327_v58 = vpop.permute.xlu1 %1761 }
 0x33d   : > { %v1375_v44 = vadd.f32 %v2269_v23, %v1214_v26  ;;  %v1311_v61 = vpop.f32.mrb[5].mxu1  ;;  %v1790_v26 = vsub.f32 %v1694_v6, %v1717_v7  ;;  %v1696_v23 = vld [vmem:[%s2865_s13 + $0x18] sm:$0xff] }
 0x33e   : > { %v1374_v36 = vadd.f32 %v1311_v61, %v1213_v54  ;;  %v3330_v54 = vpop.permute.xlu0 %1766  ;;  %v1792_v61 = vsub.f32 %v1696_v23, %v1727_v10 }
 0x33f   : > { %1391 = vst.msk [vmem:[#allocation5 + $0x28] sm:$0xff] %vm366_vm0, %v1375_v44  ;;  %v1807_v44 = vmul.f32 1.442695, %v1790_v26 }
 0x340   : > { %1390 = vst.msk [vmem:[#allocation5 + $0x20] sm:$0xff] %vm366_vm0, %v1374_v36  ;;  %v3333_v36 = vpop.permute.xlu1 %1771 }
 0x341   : > { %2525 = vpow2.f32 %v1807_v44  ;;  %v1705_v44 = vld [vmem:[%s2865_s13 + $0x60] sm:$0xff] }
 0x342   : > { %v3336_v5 = vpop.permute.xlu0 %1776  ;;  %v1801_v46 = vsub.f32 %v1705_v44, %v3333_v36 }
 0x344   : > { %v2272_v37 = vpop.f32.mrb[6].mxu1 }
 0x345   : > { %v1377_v4 = vadd.f32 %v2272_v37, %v1216_v51  ;;  %v1321_v25 = vpop.f32.mrb[7].mxu1  ;;  %v1811_v51 = vmul.f32 1.442695, %v1792_v61  ;;  %v1698_v37 = vld [vmem:[%s2865_s13 + $0x28] sm:$0xff] }
 0x346   : > { %v1376_v29 = vadd.f32 %v1321_v25, %v1215_v52  ;;  %v3338_v52 = vpop.permute.xlu1 %1781  ;;  %v2524_v25 = vpop.eup %2523 }
 0x347   : > { %1393 = vst.msk [vmem:[#allocation5 + $0x38] sm:$0xff] %vm366_vm0, %v1377_v4  ;;  %2527 = vpow2.f32 %v1811_v51  ;;  %v1794_v4 = vsub.f32 %v1698_v37, %v1737_v42  ;;  %v3341_v13 = vpop.permute.xlu0 %1786  ;;  %v1708_v51 = vld [vmem:[%s2865_s13 + $0x78] sm:$0xff] }
 0x348   : > { %1392 = vst.msk [vmem:[#allocation5 + $0x30] sm:$0xff] %vm366_vm0, %v1376_v29  ;;  %v2275_v40 = vpop.f32.mrb[8].mxu1  ;;  %2529 = vpow2.f32 %v1809_v16  ;;  %v1804_v37 = vsub.f32 %v1708_v51, %v3341_v13 }
 0x349   : > { %v1379_v9 = vadd.f32 %v2275_v40, %v1218_v22  ;;  %v1331_v43 = vpop.f32.mrb[9].mxu1  ;;  %v1517_v22 = vld [vmem:[#allocation5] sm:$0xff]  ;;  %v1793_v40 = vsub.f32 %v1697_v55, %v1732_v32  ;;  %v1815_v59 = vmul.f32 1.442695, %v1794_v4  ;;  %v1522_v32 = vld [vmem:[#allocation5 + $0x28] sm:$0xff] }
 0x34a   : > { %v1378_v62 = vadd.f32 %v1331_v43, %v1217_v33  ;;  %v1518_v43 = vld [vmem:[#allocation5 + $0x8] sm:$0xff] }
 0x34b   : > { %1395 = vst.msk [vmem:[#allocation5 + $0x48] sm:$0xff] %vm366_vm0, %v1379_v9  ;;  %v2526_v9 = vpop.eup %2525  ;;  %v1813_v1 = vmul.f32 1.442695, %v1793_v40  ;;  %2531 = vpow2.f32 %v1815_v59 }
 0x34c   : > { %1394 = vst.msk [vmem:[#allocation5 + $0x40] sm:$0xff] %vm366_vm0, %v1378_v62  ;;  %v2278_v11 = vpop.f32.mrb[10].mxu1 }
 0x34d   : > { %v1381_v12 = vadd.f32 %v2278_v11, %v1220_v27  ;;  %v1341_v3 = vpop.f32.mrb[11].mxu1  ;;  %v1700_v27 = vld [vmem:[%s2865_s13 + $0x38] sm:$0xff]  ;;  %2533 = vpow2.f32 %v1813_v1 }
 0x34e   : > { %v1380_v50 = vadd.f32 %v1341_v3, %v1219_v34  ;;  %v1796_v11 = vsub.f32 %v1700_v27, %v1747_v35  ;;  %v1524_v4 = vld [vmem:[#allocation5 + $0x38] sm:$0xff] }
 0x34f   : > { %1397 = vst.msk [vmem:[#allocation5 + $0x58] sm:$0xff] %vm366_vm0, %v1381_v12  ;;  %v1520_v12 = vld [vmem:[#allocation5 + $0x18] sm:$0xff]  ;;  %v1523_v40 = vld [vmem:[#allocation5 + $0x30] sm:$0xff] }
 0x350   : > { %1396 = vst.msk [vmem:[#allocation5 + $0x50] sm:$0xff] %vm366_vm0, %v1380_v50  ;;  %v2281_v45 = vpop.f32.mrb[12].mxu1  ;;  %v1819_v63 = vmul.f32 1.442695, %v1796_v11 }
 0x351   : > { %v1383_v49 = vadd.f32 %v2281_v45, %v1222_v38  ;;  %v1351_v19 = vpop.f32.mrb[13].mxu1  ;;  %v2528_v47 = vpop.eup %2527  ;;  %v1702_v45 = vld [vmem:[%s2865_s13 + $0x48] sm:$0xff] }
 0x352   : > { %v1382_v2 = vadd.f32 %v1351_v19, %v1221_v28  ;;  %v1795_v28 = vsub.f32 %v1699_v31, %v3320_v56  ;;  %v1798_v17 = vsub.f32 %v1702_v45, %v3325_v30  ;;  %v1519_v19 = vld [vmem:[#allocation5 + $0x10] sm:$0xff]  ;;  %2535 = vpow2.f32 %v1819_v63  ;;  %v1706_v30 = vld [vmem:[%s2865_s13 + $0x68] sm:$0xff] }
 0x353   : > { %1399 = vst.msk [vmem:[#allocation5 + $0x68] sm:$0xff] %vm366_vm0, %v1383_v49  ;;  %v2530_v49 = vpop.eup %2529  ;;  %v1703_v56 = vld [vmem:[%s2865_s13 + $0x50] sm:$0xff]  ;;  %v1802_v60 = vsub.f32 %v1706_v30, %v3336_v5  ;;  %v1526_v27 = vld [vmem:[#allocation5 + $0x48] sm:$0xff] }
 0x354   : > { %1398 = vst.msk [vmem:[#allocation5 + $0x60] sm:$0xff] %vm366_vm0, %v1382_v2  ;;  %v2284_v18 = vpop.f32.mrb[14].mxu1  ;;  %v1701_v2 = vld [vmem:[%s2865_s13 + $0x40] sm:$0xff]  ;;  %v1817_v14 = vmul.f32 1.442695, %v1795_v28  ;;  %v1799_v20 = vsub.f32 %v1703_v56, %v3327_v58 }
 0x355   : > { %v1385_v8 = vadd.f32 %v2284_v18, %v1224_v39  ;;  %v1361_v48 = vpop.f32.mrb[15].mxu1  ;;  %v1797_v18 = vsub.f32 %v1701_v2, %v3322_v21  ;;  %v2532_v10 = vpop.eup %2531  ;;  %v1831_v5 = vmul.f32 1.442695, %v1802_v60 }
 0x356   : > { %v1384_v53 = vadd.f32 %v1361_v48, %v1223_v24  ;;  %v1823_v48 = vmul.f32 1.442695, %v1798_v17  ;;  %2537 = vpow2.f32 %v1817_v14  ;;  %v1825_v58 = vmul.f32 1.442695, %v1799_v20 }
 0x357   : > { %1401 = vst.msk [vmem:[#allocation5 + $0x78] sm:$0xff] %vm366_vm0, %v1385_v8  ;;  %v1704_v8 = vld [vmem:[%s2865_s13 + $0x58] sm:$0xff]  ;;  %v1821_v21 = vmul.f32 1.442695, %v1797_v18  ;;  %v2534_v26 = vpop.eup %2533 }
 0x358   : > { %1400 = vst.msk [vmem:[#allocation5 + $0x70] sm:$0xff] %vm366_vm0, %v1384_v53  ;;  %v1800_v53 = vsub.f32 %v1704_v8, %v3330_v54  ;;  %2539 = vpow2.f32 %v1823_v48  ;;  %v1521_v54 = vld [vmem:[#allocation5 + $0x20] sm:$0xff] }
 0x359   : > { %2541 = vpow2.f32 %v1821_v21 }
 0x35a   : > { %v1827_v6 = vmul.f32 1.442695, %v1800_v53 }
 0x35b   : > { %v1529_v53 = vld [vmem:[#allocation5 + $0x60] sm:$0xff] }
 0x35c   : > { %2543 = vpow2.f32 %v1827_v6  ;;  %v2536_v16 = vpop.eup %2535 }
 0x35d   : > { %2545 = vpow2.f32 %v1825_v58 }
 0x35e   : > { %2547 = vpow2.f32 %v1831_v5 }
 0x35f   : > { %v1531_v6 = vld [vmem:[#allocation5 + $0x70] sm:$0xff] }
 0x360   : > { %v2538_v13 = vpop.eup %2537 }
 0x37c   : > { %v1536_v29 = vpop.permute.xlu1 %1535 }
 0x37d   : > { %v1613_v33 = vmul.f32 %v1536_v29, %v1517_v22  ;;  %v1837_v57 = vmul.f32 %v2524_v25, %v1536_v29  ;;  %v1707_v29 = vld [vmem:[%s2865_s13 + $0x70] sm:$0xff] }
 0x37e   : > { %v1803_v36 = vsub.f32 %v1707_v29, %v3338_v52 }
 0x37f   : > { %1629 = vst.msk [vmem:[%s3347_s29] sm:$0xff] %vm366_vm0, %v1613_v33  ;;  %1853 = vst [vmem:[%s2865_s13] sm:$0xff] %v1837_v57  ;;  %v1829_v33 = vmul.f32 1.442695, %v1801_v46  ;;  %v1835_v57 = vmul.f32 1.442695, %v1804_v37 }
 0x380   : > { %v1541_v62 = vpop.permute.xlu0 %1540 }
 0x381   : > { %v1614_v34 = vmul.f32 %v1541_v62, %v1518_v43  ;;  %v1838_v0 = vmul.f32 %v2526_v9, %v1541_v62  ;;  %v2540_v9 = vpop.eup %2539  ;;  %2549 = vpow2.f32 %v1829_v33 }
 0x382   : > { %2551 = vpow2.f32 %v1835_v57  ;;  %v2542_v11 = vpop.eup %2541 }
 0x383   : > { %1630 = vst.msk [vmem:[%s3347_s29 + $0x8] sm:$0xff] %vm366_vm0, %v1614_v34  ;;  %1854 = vst [vmem:[%s2865_s13 + $0x8] sm:$0xff] %v1838_v0  ;;  %v1833_v0 = vmul.f32 1.442695, %v1803_v36 }
 0x384   : > { %v1551_v3 = vpop.permute.xlu0 %1550 }
 0x385   : > { %v1616_v50 = vmul.f32 %v1551_v3, %v1520_v12  ;;  %v1840_v38 = vmul.f32 %v2528_v47, %v1551_v3  ;;  %v1525_v47 = vld [vmem:[#allocation5 + $0x40] sm:$0xff]  ;;  %v2544_v3 = vpop.eup %2543  ;;  %2553 = vpow2.f32 %v1833_v0 }
 0x386   : > { %v2546_v17 = vpop.eup %2545 }
 0x387   : > { %1632 = vst.msk [vmem:[%s3347_s29 + $0x18] sm:$0xff] %vm366_vm0, %v1616_v50  ;;  %1856 = vst [vmem:[%s2865_s13 + $0x18] sm:$0xff] %v1840_v38  ;;  %v1528_v38 = vld [vmem:[#allocation5 + $0x58] sm:$0xff] }
 0x388   : > { %v1546_v7 = vpop.permute.xlu1 %1545 }
 0x389   : > { %v1615_v39 = vmul.f32 %v1546_v7, %v1519_v19  ;;  %v1839_v24 = vmul.f32 %v2530_v49, %v1546_v7  ;;  %v1527_v49 = vld [vmem:[#allocation5 + $0x50] sm:$0xff]  ;;  %v2548_v7 = vpop.eup %2547 }
 0x38b   : > { %1631 = vst.msk [vmem:[%s3347_s29 + $0x10] sm:$0xff] %vm366_vm0, %v1615_v39  ;;  %1855 = vst [vmem:[%s2865_s13 + $0x10] sm:$0xff] %v1839_v24  ;;  %v1530_v24 = vld [vmem:[#allocation5 + $0x68] sm:$0xff]  ;;  %v2550_v48 = vpop.eup %2549 }
 0x38c   : > { %v1561_v42 = vpop.permute.xlu0 %1560 }
 0x38d   : > { %v1618_v35 = vmul.f32 %v1561_v42, %v1522_v32  ;;  %v1842_v41 = vmul.f32 %v2532_v10, %v1561_v42  ;;  %v2552_v32 = vpop.eup %2551 }
 0x38f   : > { %1634 = vst.msk [vmem:[%s3347_s29 + $0x28] sm:$0xff] %vm366_vm0, %v1618_v35  ;;  %1858 = vst [vmem:[%s2865_s13 + $0x28] sm:$0xff] %v1842_v41  ;;  %v1532_v35 = vld [vmem:[#allocation5 + $0x78] sm:$0xff]  ;;  %v2554_v30 = vpop.eup %2553 }
 0x390   : > { %v1556_v23 = vpop.permute.xlu1 %1555 }
 0x391   : > { %v1617_v61 = vmul.f32 %v1556_v23, %v1521_v54  ;;  %v1841_v15 = vmul.f32 %v2534_v26, %v1556_v23 }
 0x393   : > { %1633 = vst.msk [vmem:[%s3347_s29 + $0x20] sm:$0xff] %vm366_vm0, %v1617_v61  ;;  %1857 = vst [vmem:[%s2865_s13 + $0x20] sm:$0xff] %v1841_v15 }
 0x394   : > { %v1571_v25 = vpop.permute.xlu0 %1570 }
 0x395   : > { %v1620_v22 = vmul.f32 %v1571_v25, %v1524_v4  ;;  %v1844_v55 = vmul.f32 %v2536_v16, %v1571_v25 }
 0x397   : > { %1636 = vst.msk [vmem:[%s3347_s29 + $0x38] sm:$0xff] %vm366_vm0, %v1620_v22  ;;  %1860 = vst [vmem:[%s2865_s13 + $0x38] sm:$0xff] %v1844_v55 }
 0x398   : > { %v1566_v59 = vpop.permute.xlu1 %1565 }
 0x399   : > { %v1619_v43 = vmul.f32 %v1566_v59, %v1523_v40  ;;  %v1843_v62 = vmul.f32 %v2538_v13, %v1566_v59  ;;  %v1581_v34 = vpop.permute.xlu0 %1580 }
 0x39a   : > { %v1622_v52 = vmul.f32 %v1581_v34, %v1526_v27  ;;  %v1846_v1 = vmul.f32 %v2540_v9, %v1581_v34 }
 0x39b   : > { %1635 = vst.msk [vmem:[%s3347_s29 + $0x30] sm:$0xff] %vm366_vm0, %v1619_v43  ;;  %1859 = vst [vmem:[%s2865_s13 + $0x30] sm:$0xff] %v1843_v62 }
 0x39c   : > { %1638 = vst.msk [vmem:[%s3347_s29 + $0x48] sm:$0xff] %vm366_vm0, %v1622_v52  ;;  %1862 = vst [vmem:[%s2865_s13 + $0x48] sm:$0xff] %v1846_v1  ;;  %v1576_v12 = vpop.permute.xlu1 %1575 }
 0x39d   : > { %v1621_v31 = vmul.f32 %v1576_v12, %v1525_v47  ;;  %v1845_v50 = vmul.f32 %v2542_v11, %v1576_v12  ;;  %v1591_v28 = vpop.permute.xlu0 %1590 }
 0x39e   : > { %v1624_v63 = vmul.f32 %v1591_v28, %v1528_v38  ;;  %v1848_v45 = vmul.f32 %v2544_v3, %v1591_v28 }
 0x39f   : > { %1637 = vst.msk [vmem:[%s3347_s29 + $0x40] sm:$0xff] %vm366_vm0, %v1621_v31  ;;  %1861 = vst [vmem:[%s2865_s13 + $0x40] sm:$0xff] %v1845_v50 }
 0x3a0   : > { %1640 = vst.msk [vmem:[%s3347_s29 + $0x58] sm:$0xff] %vm366_vm0, %v1624_v63  ;;  %1864 = vst [vmem:[%s2865_s13 + $0x58] sm:$0xff] %v1848_v45  ;;  %v1586_v19 = vpop.permute.xlu1 %1585 }
 0x3a1   : > { %v1623_v2 = vmul.f32 %v1586_v19, %v1527_v49  ;;  %v1847_v39 = vmul.f32 %v2546_v17, %v1586_v19  ;;  %v1601_v14 = vpop.permute.xlu0 %1600 }
 0x3a2   : > { %v1626_v18 = vmul.f32 %v1601_v14, %v1530_v24  ;;  %v1850_v8 = vmul.f32 %v2548_v7, %v1601_v14 }
 0x3a3   : > { %1639 = vst.msk [vmem:[%s3347_s29 + $0x50] sm:$0xff] %vm366_vm0, %v1623_v2  ;;  %1863 = vst [vmem:[%s2865_s13 + $0x50] sm:$0xff] %v1847_v39 }
 0x3a4   : > { %1642 = vst.msk [vmem:[%s3347_s29 + $0x68] sm:$0xff] %vm366_vm0, %v1626_v18  ;;  %1866 = vst [vmem:[%s2865_s13 + $0x68] sm:$0xff] %v1850_v8  ;;  %v1596_v10 = vpop.permute.xlu1 %1595 }
 0x3a5   : > { %v1625_v42 = vmul.f32 %v1596_v10, %v1529_v53  ;;  %v1849_v56 = vmul.f32 %v2550_v48, %v1596_v10  ;;  %v1611_v41 = vpop.permute.xlu0 %1610 }
 0x3a6   : > { %v1628_v21 = vmul.f32 %v1611_v41, %v1532_v35  ;;  %v1852_v20 = vmul.f32 %v2552_v32, %v1611_v41 }
 0x3a7   : > { %1641 = vst.msk [vmem:[%s3347_s29 + $0x60] sm:$0xff] %vm366_vm0, %v1625_v42  ;;  %1865 = vst [vmem:[%s2865_s13 + $0x60] sm:$0xff] %v1849_v56 }
 0x3a8   : > { %1644 = vst.msk [vmem:[%s3347_s29 + $0x78] sm:$0xff] %vm366_vm0, %v1628_v21  ;;  %1868 = vst [vmem:[%s2865_s13 + $0x78] sm:$0xff] %v1852_v20  ;;  %v1606_v60 = vpop.permute.xlu1 %1605 }
 0x3a9   : > { %v1627_v26 = vmul.f32 %v1606_v60, %v1531_v6  ;;  %v1851_v54 = vmul.f32 %v2554_v30, %v1606_v60 }
 0x3ab   : > { %1643 = vst.msk [vmem:[%s3347_s29 + $0x70] sm:$0xff] %vm366_vm0, %v1627_v26  ;;  %1867 = vst [vmem:[%s2865_s13 + $0x70] sm:$0xff] %v1851_v54 }
 0x3ac   : > { %2568 = shalt.err (!%p2565_p5)
}
 0x3ad   : > { %s2569_s11 = scalar_lea.hbm %s3419_s8, 2048  ;;  %s2573_s22 = scalar_lea.hbm %s3478_s4, 4096 }
 0x3ae   : > { %p2570_p6 = scmp.ne.s32.totalorder %s3419_s8, %s2569_s11  ;;  %p2574_p10 = scmp.lt.u32.totalorder %s3419_s8, %s3478_s4 }
 0x3af   : > { %p2575_p11 = scmp.lt.u32.totalorder %s2573_s22, %s2569_s11  ;;  %p2577_p13 = scmp.lt.u32.totalorder %s2569_s11, %s3419_s8 }
 0x3b0   : > { %p2571_p7 = pnand %p2570_p6, %p2706_p4 }
 0x3b1   : > { %p2576_p12 = por %p2575_p11, %p2574_p10 }
 0x3b2   : > { %p2572_p9 = pneg %p2571_p7 }
 0x3b3   : > { %p2578_p0 = por %p2577_p13, %p2576_p12 }
 0x3b5   : > { %p2579_p1 = pnand %p2578_p0, %p2572_p9 }
 0x3b7   : > { %2582 = shalt.err (!%p2579_p1)
}
 0x3b8   : > { %s2639_s29 = smov 128   ;;  %s2640_s30 = smov 8  }
 0x3b9   : > { %2365 = dma.vmem_to_hbm [thread:$0]  (%p2706_p4), %s3421_s5, 2048, %s3419_s8, %s3428_s18, %s2639_s29, %s2639_s29, %s2640_s30  }
 0x3ba PF: > { %p2371_p2 = scmp.ge.s32.totalorder %s2633_s20, 2  ;;  %s1925_s6 = sand.u32 1, %s2613_s15  }
 0x3bb   : > { %s1926_s7 = scalar_lea.sflag [#allocation7], %s1925_s6 }
 0x3bc   : > { %p2368_p3 = pnand %p2371_p2, %p2713_p8 }
 0x3be   : > { %2608 = dma.done.wait (!%p2368_p3), %s1926_s7, 2048  }
 0x3bf   : > { %2610 = vsyncadd (!%p2368_p3), %s1926_s7, 4294965248  ;;  %s18_s20 = sadd.s32 1, %s2633_s20   ;;  %s3483_s15 = smov %s2617_s16 }
 0x3c0   : > { %p15_p5 = scmp.ge.s32.totalorder %s18_s20, 4   ;;  %s3484_s16 = smov %s2621_s17 }
 0x3c1   : > { %s3485_s17 = smov %s2719_s28  ;;  %s3486_s18 = smov %s2629_s19 }
 0x3c2   : > { %s3487_s19 = smov %s3489_s23  ;;  %17 = sbr.rel (!%p15_p5) target bundleno = 4 (0x4), region = 93 }
 0x3c9   :  { %1931 = vsyncpa [#allocation7], 1 }
 0x3ca   :  { %1933 = vsyncpa [#allocation7 + $0x1], 1 }

</bundles_post_ra>
